<compile_context>
chip_gen: v6e
topology: v6e:2x2x1
jax: 0.10.0
libtpu: 0.0.40
codegen_flags: <defaults>
</compile_context>

<pallas_src>
import functools

import jax
import jax.numpy as jnp
import numpy as np
from jax import lax
from jax.experimental import pallas as pl
from jax.experimental.pallas import tpu as pltpu


# ---------------------------------------------------------------------------
# Fused Bottleneck kernel (one (batch, row-tile) grid point per invocation).
# ---------------------------------------------------------------------------
def _bottleneck_kernel(x_top_ref, x_main_ref, x_bot_ref,
                       w1_ref, s1_ref, b1_ref,
                       w2_ref, s2_ref, b2_ref,
                       w3_ref, s3_ref, b3_ref,
                       o_ref, *, TH, W, Cin, Cmid, Cout):
    t = pl.program_id(1)
    last = pl.num_programs(1) - 1
    wdt = w1_ref.dtype                     # storage / MXU-input dtype

    # ---- conv1 (1x1) + bn1 + relu: three dots (main + two 1-row halos) -----
    w1 = w1_ref[...]
    s1 = s1_ref[...]
    b1 = b1_ref[...]

    def conv1(xm):                          # (rows, Cin) -> (rows, Cmid)
        m = jnp.dot(xm, w1, preferred_element_type=jnp.float32)
        return jnp.maximum(m * s1 + b1, 0.0).astype(wdt)   # cast early (bf16)

    mid_main = conv1(x_main_ref[0].reshape(TH * W, Cin))    # (TH*W, Cmid)
    mid_top = conv1(x_top_ref[0].reshape(W, Cin))           # (W, Cmid)
    mid_bot = conv1(x_bot_ref[0].reshape(W, Cin))           # (W, Cmid)

    # Halo rows outside the image must be *zero* mid-activations (conv2's zero
    # padding), not conv1(clamped row); mask at the first / last row tile.
    mid_top = jnp.where(t == 0, jnp.zeros_like(mid_top), mid_top)
    mid_bot = jnp.where(t == last, jnp.zeros_like(mid_bot), mid_bot)

    # (TH+2)-row slab, flattened: flat row f <-> (slab row f // W, col f % W).
    slab = jnp.concatenate([mid_top, mid_main, mid_bot], axis=0)  # ((TH+2)*W, Cmid)

    # Width-shifted slabs for the dx = -1 / +1 taps.  Shift by one flat row;
    # row-boundary wrap is exactly the x==0 / x==W-1 positions, which are
    # masked to zero (== conv2's width zero padding).
    R = (TH + 2) * W
    xcol = lax.broadcasted_iota(jnp.int32, (R, 1), 0) % W
    zrow = jnp.zeros((1, Cmid), wdt)
    lsh = jnp.concatenate([zrow, slab[:R - 1]], axis=0)           # [f] = slab[f-1]
    rsh = jnp.concatenate([slab[1:], zrow], axis=0)               # [f] = slab[f+1]
    left = jnp.where(xcol == 0, jnp.zeros_like(lsh), lsh)         # in[..., x-1]
    right = jnp.where(xcol == W - 1, jnp.zeros_like(rsh), rsh)    # in[..., x+1]
    taps = (left, slab, right)                                    # kx = 0, 1, 2

    # ---- conv2 (3x3): 9 accumulated MXU dots, no materialized im2col -------
    h = jnp.zeros((TH * W, Cmid), jnp.float32)
    for ky in range(3):
        for kx in range(3):
            lhs = taps[kx][ky * W: ky * W + TH * W]               # (TH*W, Cmid)
            h = h + jnp.dot(lhs, w2_ref[ky * 3 + kx],
                            preferred_element_type=jnp.float32)
    h = jnp.maximum(h * s2_ref[...] + b2_ref[...], 0.0)           # bn2 + relu

    # ---- conv3 (1x1) + bn3 + residual + relu --------------------------------
    y = jnp.dot(h.astype(wdt), w3_ref[...],
                preferred_element_type=jnp.float32)
    y = y * s3_ref[...] + b3_ref[...]                             # bn3
    res = x_main_ref[0].reshape(TH * W, Cout).astype(jnp.float32)
    out = jnp.maximum(y + res, 0.0)
    o_ref[...] = out.reshape(1, TH * W, Cout).astype(o_ref.dtype)


# ---------------------------------------------------------------------------
# Generation-aware VMEM budget + row-tile selection.
# ---------------------------------------------------------------------------
def _vmem_budget_bytes():
    try:
        cap = int(pltpu.get_tpu_info().vmem_capacity_bytes)       # 64 MiB on v7x
    except Exception:
        cap = 64 * 1024 * 1024                                    # safe default
    return min(int(cap * 0.75), 96 * 1024 * 1024)


def _pick_row_tile(H, W, Cin, Cmid, Cout, itemsize, budget_bytes, n_batch):
    """Largest divisor TH of H whose per-tile working set fits the budget."""
    weight_bytes = (itemsize * (Cin * Cmid + 9 * Cmid * Cmid + Cmid * Cout)
                    + 4 * 2 * (2 * Cmid + Cout))

    def tile_bytes(th):
        rows = th * W
        slab = (th + 2) * W
        b = 2 * itemsize * rows * Cin          # x main block (double-buffered)
        b += 2 * itemsize * 2 * W * Cin        # two halo rows (double-buffered)
        b += 2 * itemsize * rows * Cout        # output block (double-buffered)
        b += 4 * slab * Cmid                   # f32 conv1 result before cast
        b += 3 * itemsize * slab * Cmid        # mid slab + 2 shifted copies
        b += 4 * rows * Cmid                   # conv2 f32 accumulator
        b += 4 * rows * Cout                   # conv3 / epilogue f32
        return b

    def ok(th):
        return (H % th == 0 and ((th * W) % 8 == 0 or th == H)
                and weight_bytes + tile_bytes(th) <= budget_bytes)

    best = None
    for th in range(H, 0, -1):
        if ok(th):
            best = th
            break
    if best is None:
        best = 1
    # Megacore (v7x): make sure there are >=2 parallel grid points if possible.
    if n_batch == 1 and H // best < 2:
        for th in range(best - 1, 0, -1):
            if ok(th):
                best = th
                break
    # TODO(synk): for tiny spatial stages (e.g. 7x7) TH*W may not be a multiple
    # of 8 -> masked output stores; padding M in-kernel would avoid that.
    return best


# ---------------------------------------------------------------------------
# NHWC entry point (no layout transposes) -- preferred inside a ResNet chain.
# ---------------------------------------------------------------------------
def bottleneck_forward_nhwc(x_nhwc, params, row_tile=None, storage_dtype=None):
    (w1, s1, b1, w2, s2, b2, w3, s3, b3) = params
    N, H, W, Cin = x_nhwc.shape
    Cmid = w1.shape[0]                  # planes
    Cout = w3.shape[0]                  # planes * 4
    if Cin != Cout:
        raise NotImplementedError(
            "Identity-residual Bottleneck only (downsample=None, stride=1): "
            "requires inplanes == planes * expansion.")
    # TODO(synk): stride>1 / downsample branch not implemented.

    dt = jnp.dtype(x_nhwc.dtype if storage_dtype is None else storage_dtype)
    x_nhwc = x_nhwc.astype(dt)
    itemsize = int(dt.itemsize)

    budget = _vmem_budget_bytes()
    TH = (row_tile if row_tile is not None
          else _pick_row_tile(H, W, Cin, Cmid, Cout, itemsize, budget, N))
    if H % TH != 0:
        TH = H
    n_tiles = H // TH

    # Weights reshaped for matmul form (storage dtype); w2 as 9 per-tap mats.
    w1_mat = w1.reshape(Cmid, Cin).T.astype(dt)                        # (Cin, Cmid)
    w2_taps = jnp.transpose(w2, (2, 3, 1, 0)).reshape(9, Cmid, Cmid).astype(dt)
    w3_mat = w3.reshape(Cout, Cmid).T.astype(dt)                       # (Cmid, Cout)

    # Folded BN params stay f32 (epilogue math is f32).
    s1r = s1.reshape(1, Cmid).astype(jnp.float32)
    b1r = b1.reshape(1, Cmid).astype(jnp.float32)
    s2r = s2.reshape(1, Cmid).astype(jnp.float32)
    b2r = b2.reshape(1, Cmid).astype(jnp.float32)
    s3r = s3.reshape(1, Cout).astype(jnp.float32)
    b3r = b3.reshape(1, Cout).astype(jnp.float32)

    kernel = functools.partial(_bottleneck_kernel,
                               TH=TH, W=W, Cin=Cin, Cmid=Cmid, Cout=Cout)

    flops = 2 * N * H * W * (Cin * Cmid + 9 * Cmid * Cmid + Cmid * Cout)
    bytes_accessed = itemsize * (
        N * H * W * (Cin + Cout)               # x (main) + output
        + 2 * N * n_tiles * W * Cin            # halo rows (re-read)
        + Cin * Cmid + 9 * Cmid * Cmid + Cmid * Cout)

    def vmem_const():
        # Whole array resident in VMEM, no grid blocking, no double buffer.
        return pl.BlockSpec(memory_space=pltpu.MemorySpace.VMEM)

    out2d = pl.pallas_call(
        kernel,
        out_shape=jax.ShapeDtypeStruct((N, H * W, Cout), dt),
        grid_spec=pltpu.PrefetchScalarGridSpec(
            num_scalar_prefetch=0,
            grid=(N, n_tiles),
            in_specs=[
                # top halo row (clamped; masked to zero in-kernel at t == 0)
                pl.BlockSpec((1, 1, W, Cin),
                             lambda n, t: (n, jnp.maximum(t * TH - 1, 0), 0, 0)),
                # main TH rows (also serve as the residual)
                pl.BlockSpec((1, TH, W, Cin), lambda n, t: (n, t, 0, 0)),
                # bottom halo row (clamped; masked at the last tile)
                pl.BlockSpec((1, 1, W, Cin),
                             lambda n, t: (n, jnp.minimum((t + 1) * TH, H - 1), 0, 0)),
                vmem_const(),   # w1
                vmem_const(),   # s1
                vmem_const(),   # b1
                vmem_const(),   # w2 (9, Cmid, Cmid)
                vmem_const(),   # s2
                vmem_const(),   # b2
                vmem_const(),   # w3
                vmem_const(),   # s3
                vmem_const(),   # b3
            ],
            out_specs=pl.BlockSpec((1, TH * W, Cout), lambda n, t: (n, t, 0)),
        ),
        compiler_params=pltpu.CompilerParams(
            dimension_semantics=("parallel", "parallel"),
            vmem_limit_bytes=budget),
        cost_estimate=pl.CostEstimate(flops=flops, transcendentals=0,
                                      bytes_accessed=bytes_accessed),
    )(x_nhwc, x_nhwc, x_nhwc,
      w1_mat, s1r, b1r, w2_taps, s2r, b2r, w3_mat, s3r, b3r)

    return out2d.reshape(N, H, W, Cout)


# ---------------------------------------------------------------------------
# NCHW wrapper matching the PyTorch module's interface.
# ---------------------------------------------------------------------------
def bottleneck_forward(x_nchw, params, row_tile=None, storage_dtype=None):
    x_nhwc = jnp.transpose(x_nchw, (0, 2, 3, 1))            # one pass in
    out_nhwc = bottleneck_forward_nhwc(x_nhwc, params, row_tile, storage_dtype)
    return jnp.transpose(out_nhwc, (0, 3, 1, 2))            # one pass out


# ---------------------------------------------------------------------------
# Pure-JAX reference (NCHW, matching PyTorch semantics) for verification.
# ---------------------------------------------------------------------------
def bottleneck_reference(x, params):
    (w1, s1, b1, w2, s2, b2, w3, s3, b3) = params
    dn = ("NCHW", "OIHW", "NCHW")

    def bn(o, s, b):
        return o * s[None, :, None, None] + b[None, :, None, None]

    out = lax.conv_general_dilated(x, w1, (1, 1), "VALID", dimension_numbers=dn)
    out = jnp.maximum(bn(out, s1, b1), 0.0)
    out = lax.conv_general_dilated(out, w2, (1, 1), "SAME", dimension_numbers=dn)
    out = jnp.maximum(bn(out, s2, b2), 0.0)
    out = lax.conv_general_dilated(out, w3, (1, 1), "VALID", dimension_numbers=dn)
    out = bn(out, s3, b3)
    return jnp.maximum(out + x, 0.0)


def make_params(key, inplanes, planes):
    expansion = 4
    eps = 1e-5
    ks = jax.random.split(key, 12)

    def bn_fold(kg, kb, km, kv, c):
        gamma = 1.0 + 0.1 * jax.random.normal(kg, (c,), jnp.float32)
        beta = 0.1 * jax.random.normal(kb, (c,), jnp.float32)
        mean = 0.1 * jax.random.normal(km, (c,), jnp.float32)
        var = jax.random.uniform(kv, (c,), jnp.float32, 0.5, 1.5)
        scale = gamma / jnp.sqrt(var + eps)
        shift = beta - mean * scale
        return scale, shift

    w1 = 0.1 * jax.random.normal(ks[0], (planes, inplanes, 1, 1), jnp.float32)
    w2 = 0.1 * jax.random.normal(ks[1], (planes, planes, 3, 3), jnp.float32)
    w3 = 0.1 * jax.random.normal(ks[2], (planes * expansion, planes, 1, 1),
                                 jnp.float32)
    s1, b1 = bn_fold(ks[3], ks[4], ks[5], ks[6], planes)
    s2, b2 = bn_fold(ks[7], ks[8], ks[9], ks[10], planes)
    s3, b3 = bn_fold(ks[11], ks[3], ks[7], ks[0], planes * expansion)
    return (w1, s1, b1, w2, s2, b2, w3, s3, b3)


if __name__ == "__main__":
    # Small, residual-compatible config: inplanes == planes * expansion.
    N, planes, H, W = 2, 4, 16, 16
    inplanes = planes * 4                       # 16 channels in/out

    key = jax.random.PRNGKey(0)
    kx, kp = jax.random.split(key)
    x = jax.random.normal(kx, (N, inplanes, H, W), jnp.float32)   # NCHW input
    params = make_params(kp, inplanes, planes)

    ref = jax.block_until_ready(bottleneck_reference(x, params))

    # 1) f32 path, small explicit row tile -> 4 tiles/image, exercises halos.
    fwd32 = jax.jit(functools.partial(bottleneck_forward, row_tile=4))
    out32 = jax.block_until_ready(fwd32(x, params))
    assert out32.shape == (N, inplanes, H, W)
    np.testing.assert_allclose(np.asarray(out32), np.asarray(ref),
                               rtol=5e-4, atol=5e-4)

    # 2) f32 path, VMEM-budget-driven automatic tiling.
    fwd_auto = jax.jit(bottleneck_forward)
    out_auto = jax.block_until_ready(fwd_auto(x, params))
    np.testing.assert_allclose(np.asarray(out_auto), np.asarray(ref),
                               rtol=5e-4, atol=5e-4)

    # 3) bf16-storage path (HBM-bound op: ~2x less traffic; f32 accumulation).
    fwd_bf16 = jax.jit(functools.partial(bottleneck_forward,
                                         storage_dtype=jnp.bfloat16))
    out_bf16 = jax.block_until_ready(fwd_bf16(x, params))
    np.testing.assert_allclose(np.asarray(out_bf16).astype(np.float32),
                               np.asarray(ref), rtol=1e-1, atol=1e-1)

    print("KERNEL_OK")
</pallas_src>

<mosaic_0001>
module attributes {stable_mosaic.version = 11 : i64} {
  func.func @_bottleneck_kernel(%arg0: i32, %arg1: i32, %arg2: memref<1x1x16x16xf32, #tpu.memory_space<vmem>>, %arg3: memref<1x4x16x16xf32, #tpu.memory_space<vmem>>, %arg4: memref<1x1x16x16xf32, #tpu.memory_space<vmem>>, %arg5: memref<16x4xf32, #tpu.memory_space<vmem>>, %arg6: memref<1x4xf32, #tpu.memory_space<vmem>>, %arg7: memref<1x4xf32, #tpu.memory_space<vmem>>, %arg8: memref<9x4x4xf32, #tpu.memory_space<vmem>>, %arg9: memref<1x4xf32, #tpu.memory_space<vmem>>, %arg10: memref<1x4xf32, #tpu.memory_space<vmem>>, %arg11: memref<4x16xf32, #tpu.memory_space<vmem>>, %arg12: memref<1x16xf32, #tpu.memory_space<vmem>>, %arg13: memref<1x16xf32, #tpu.memory_space<vmem>>, %arg14: memref<1x64x16xf32, #tpu.memory_space<vmem>>) attributes {dimension_semantics = [#tpu.dimension_semantics<parallel>, #tpu.dimension_semantics<parallel>], iteration_bounds = array<i64: 2, 4>, scalar_prefetch = 0 : i64, scratch_operands = 0 : i64, tpu.core_type = #tpu.core_type<tc>, window_params = [{transform_indices = @transform_0, window_bounds = array<i64: 1, 1, 16, 16>}, {transform_indices = @transform_1, window_bounds = array<i64: 1, 4, 16, 16>}, {transform_indices = @transform_2, window_bounds = array<i64: 1, 1, 16, 16>}, {pipeline_mode = #tpu.pipeline_mode<synchronous>, transform_indices = @transform_3, window_bounds = array<i64: 16, 4>}, {pipeline_mode = #tpu.pipeline_mode<synchronous>, transform_indices = @transform_4, window_bounds = array<i64: 1, 4>}, {pipeline_mode = #tpu.pipeline_mode<synchronous>, transform_indices = @transform_5, window_bounds = array<i64: 1, 4>}, {pipeline_mode = #tpu.pipeline_mode<synchronous>, transform_indices = @transform_6, window_bounds = array<i64: 9, 4, 4>}, {pipeline_mode = #tpu.pipeline_mode<synchronous>, transform_indices = @transform_7, window_bounds = array<i64: 1, 4>}, {pipeline_mode = #tpu.pipeline_mode<synchronous>, transform_indices = @transform_8, window_bounds = array<i64: 1, 4>}, {pipeline_mode = #tpu.pipeline_mode<synchronous>, transform_indices = @transform_9, window_bounds = array<i64: 4, 16>}, {pipeline_mode = #tpu.pipeline_mode<synchronous>, transform_indices = @transform_10, window_bounds = array<i64: 1, 16>}, {pipeline_mode = #tpu.pipeline_mode<synchronous>, transform_indices = @transform_11, window_bounds = array<i64: 1, 16>}, {transform_indices = @transform_12, window_bounds = array<i64: 1, 64, 16>}]} {
    %c0 = arith.constant 0 : index
    %c0_0 = arith.constant 0 : index
    %0 = vector.load %arg5[%c0, %c0_0] : memref<16x4xf32, #tpu.memory_space<vmem>>, vector<16x4xf32>
    %c0_1 = arith.constant 0 : index
    %c0_2 = arith.constant 0 : index
    %1 = vector.load %arg6[%c0_1, %c0_2] : memref<1x4xf32, #tpu.memory_space<vmem>>, vector<1x4xf32>
    %c0_3 = arith.constant 0 : index
    %c0_4 = arith.constant 0 : index
    %2 = vector.load %arg7[%c0_3, %c0_4] : memref<1x4xf32, #tpu.memory_space<vmem>>, vector<1x4xf32>
    %c0_5 = arith.constant 0 : index
    %c0_6 = arith.constant 0 : index
    %c0_7 = arith.constant 0 : index
    %c0_8 = arith.constant 0 : index
    %3 = vector.load %arg3[%c0_5, %c0_6, %c0_7, %c0_8] : memref<1x4x16x16xf32, #tpu.memory_space<vmem>>, vector<1x4x16x16xf32>
    %4 = vector.shape_cast %3 : vector<1x4x16x16xf32> to vector<4x16x16xf32>
    %5 = vector.shape_cast %4 : vector<4x16x16xf32> to vector<64x16xf32>
    %cst = arith.constant dense<0.000000e+00> : vector<64x4xf32>
    %6 = tpu.matmul %5, %0, %cst {dimension_numbers = #tpu.dot_dimension_numbers<[1], [0], [0], [1], [0, 0, 1, 1], [], []>} : vector<64x16xf32>, vector<16x4xf32>, vector<64x4xf32> -> vector<64x4xf32>
    %7 = vector.broadcast %1 : vector<1x4xf32> to vector<64x4xf32>
    %8 = arith.mulf %6, %7 : vector<64x4xf32>
    %9 = vector.broadcast %2 : vector<1x4xf32> to vector<64x4xf32>
    %10 = arith.addf %8, %9 : vector<64x4xf32>
    %cst_9 = arith.constant 0.000000e+00 : f32
    %11 = vector.broadcast %cst_9 : f32 to vector<64x4xf32>
    %12 = arith.maximumf %10, %11 : vector<64x4xf32>
    %c0_10 = arith.constant 0 : index
    %c0_11 = arith.constant 0 : index
    %c0_12 = arith.constant 0 : index
    %c0_13 = arith.constant 0 : index
    %13 = vector.load %arg2[%c0_10, %c0_11, %c0_12, %c0_13] : memref<1x1x16x16xf32, #tpu.memory_space<vmem>>, vector<1x1x16x16xf32>
    %14 = vector.shape_cast %13 : vector<1x1x16x16xf32> to vector<1x16x16xf32>
    %15 = vector.shape_cast %14 : vector<1x16x16xf32> to vector<16x16xf32>
    %cst_14 = arith.constant dense<0.000000e+00> : vector<16x4xf32>
    %16 = tpu.matmul %15, %0, %cst_14 {dimension_numbers = #tpu.dot_dimension_numbers<[1], [0], [0], [1], [0, 0, 1, 1], [], []>} : vector<16x16xf32>, vector<16x4xf32>, vector<16x4xf32> -> vector<16x4xf32>
    %17 = vector.broadcast %1 : vector<1x4xf32> to vector<16x4xf32>
    %18 = arith.mulf %16, %17 : vector<16x4xf32>
    %19 = vector.broadcast %2 : vector<1x4xf32> to vector<16x4xf32>
    %20 = arith.addf %18, %19 : vector<16x4xf32>
    %cst_15 = arith.constant 0.000000e+00 : f32
    %21 = vector.broadcast %cst_15 : f32 to vector<16x4xf32>
    %22 = arith.maximumf %20, %21 : vector<16x4xf32>
    %c0_16 = arith.constant 0 : index
    %c0_17 = arith.constant 0 : index
    %c0_18 = arith.constant 0 : index
    %c0_19 = arith.constant 0 : index
    %23 = vector.load %arg4[%c0_16, %c0_17, %c0_18, %c0_19] : memref<1x1x16x16xf32, #tpu.memory_space<vmem>>, vector<1x1x16x16xf32>
    %24 = vector.shape_cast %23 : vector<1x1x16x16xf32> to vector<1x16x16xf32>
    %25 = vector.shape_cast %24 : vector<1x16x16xf32> to vector<16x16xf32>
    %cst_20 = arith.constant dense<0.000000e+00> : vector<16x4xf32>
    %26 = tpu.matmul %25, %0, %cst_20 {dimension_numbers = #tpu.dot_dimension_numbers<[1], [0], [0], [1], [0, 0, 1, 1], [], []>} : vector<16x16xf32>, vector<16x4xf32>, vector<16x4xf32> -> vector<16x4xf32>
    %27 = vector.broadcast %1 : vector<1x4xf32> to vector<16x4xf32>
    %28 = arith.mulf %26, %27 : vector<16x4xf32>
    %29 = vector.broadcast %2 : vector<1x4xf32> to vector<16x4xf32>
    %30 = arith.addf %28, %29 : vector<16x4xf32>
    %cst_21 = arith.constant 0.000000e+00 : f32
    %31 = vector.broadcast %cst_21 : f32 to vector<16x4xf32>
    %32 = arith.maximumf %30, %31 : vector<16x4xf32>
    %c0_i32 = arith.constant 0 : i32
    %33 = arith.cmpi eq, %arg1, %c0_i32 : i32
    %cst_22 = arith.constant 0.000000e+00 : f32
    %34 = vector.broadcast %cst_22 : f32 to vector<16x4xf32>
    %35 = arith.select %33, %34, %22 : vector<16x4xf32>
    %c3_i32 = arith.constant 3 : i32
    %36 = arith.cmpi eq, %arg1, %c3_i32 : i32
    %cst_23 = arith.constant 0.000000e+00 : f32
    %37 = vector.broadcast %cst_23 : f32 to vector<16x4xf32>
    %38 = arith.select %36, %37, %32 : vector<16x4xf32>
    %39 = tpu.concatenate %35, %12, %38 in 0 : vector<16x4xf32>, vector<64x4xf32>, vector<16x4xf32> -> vector<96x4xf32>
    %40 = tpu.iota {dimensions = array<i32: 0>} : vector<96x1xi32>
    %c16_i32 = arith.constant 16 : i32
    %c0_i32_24 = arith.constant 0 : i32
    %41 = arith.cmpi eq, %c16_i32, %c0_i32_24 : i32
    %c1_i32 = arith.constant 1 : i32
    %42 = arith.select %41, %c1_i32, %c16_i32 : i32
    %43 = vector.broadcast %42 : i32 to vector<96x1xi32>
    %44 = arith.remsi %40, %43 : vector<96x1xi32>
    %c0_i32_25 = arith.constant 0 : i32
    %45 = vector.broadcast %c0_i32_25 : i32 to vector<96x1xi32>
    %46 = arith.cmpi ne, %44, %45 : vector<96x1xi32>
    %c0_i32_26 = arith.constant 0 : i32
    %47 = vector.broadcast %c0_i32_26 : i32 to vector<96x1xi32>
    %48 = arith.cmpi slt, %44, %47 : vector<96x1xi32>
    %c0_i32_27 = arith.constant 0 : i32
    %49 = arith.cmpi slt, %42, %c0_i32_27 : i32
    %50 = vector.broadcast %49 : i1 to vector<96x1xi1>
    %51 = vector.broadcast %50 : vector<96x1xi1> to vector<96x1xi1>
    %52 = arith.xori %48, %51 : vector<96x1xi1>
    %53 = arith.andi %52, %46 : vector<96x1xi1>
    %54 = vector.broadcast %42 : i32 to vector<96x1xi32>
    %55 = arith.addi %44, %54 : vector<96x1xi32>
    %56 = arith.select %53, %55, %44 : vector<96x1xi1>, vector<96x1xi32>
    %cst_28 = arith.constant 0.000000e+00 : f32
    %57 = vector.broadcast %cst_28 : f32 to vector<1x4xf32>
    %58 = vector.extract_strided_slice %39 {offsets = [0, 0], sizes = [95, 4], strides = [1, 1]} : vector<96x4xf32> to vector<95x4xf32>
    %59 = tpu.concatenate %57, %58 in 0 : vector<1x4xf32>, vector<95x4xf32> -> vector<96x4xf32>
    %60 = vector.extract_strided_slice %39 {offsets = [1, 0], sizes = [95, 4], strides = [1, 1]} : vector<96x4xf32> to vector<95x4xf32>
    %61 = tpu.concatenate %60, %57 in 0 : vector<95x4xf32>, vector<1x4xf32> -> vector<96x4xf32>
    %c0_i32_29 = arith.constant 0 : i32
    %62 = vector.broadcast %c0_i32_29 : i32 to vector<96x1xi32>
    %63 = arith.cmpi eq, %56, %62 : vector<96x1xi32>
    %cst_30 = arith.constant 0.000000e+00 : f32
    %64 = vector.broadcast %cst_30 : f32 to vector<96x4xf32>
    %65 = vector.shape_cast %63 : vector<96x1xi1> to vector<96x1xi1>
    %66 = vector.broadcast %65 : vector<96x1xi1> to vector<96x4xi1>
    %67 = arith.select %66, %64, %59 : vector<96x4xi1>, vector<96x4xf32>
    %c15_i32 = arith.constant 15 : i32
    %68 = vector.broadcast %c15_i32 : i32 to vector<96x1xi32>
    %69 = arith.cmpi eq, %56, %68 : vector<96x1xi32>
    %cst_31 = arith.constant 0.000000e+00 : f32
    %70 = vector.broadcast %cst_31 : f32 to vector<96x4xf32>
    %71 = vector.shape_cast %69 : vector<96x1xi1> to vector<96x1xi1>
    %72 = vector.broadcast %71 : vector<96x1xi1> to vector<96x4xi1>
    %73 = arith.select %72, %70, %61 : vector<96x4xi1>, vector<96x4xf32>
    %cst_32 = arith.constant 0.000000e+00 : f32
    %74 = vector.broadcast %cst_32 : f32 to vector<64x4xf32>
    %75 = vector.extract_strided_slice %67 {offsets = [0, 0], sizes = [64, 4], strides = [1, 1]} : vector<96x4xf32> to vector<64x4xf32>
    %c0_33 = arith.constant 0 : index
    %c0_34 = arith.constant 0 : index
    %c0_35 = arith.constant 0 : index
    %76 = vector.load %arg8[%c0_33, %c0_34, %c0_35] : memref<9x4x4xf32, #tpu.memory_space<vmem>>, vector<1x4x4xf32>
    %77 = vector.shape_cast %76 : vector<1x4x4xf32> to vector<4x4xf32>
    %cst_36 = arith.constant dense<0.000000e+00> : vector<64x4xf32>
    %78 = tpu.matmul %75, %77, %cst_36 {dimension_numbers = #tpu.dot_dimension_numbers<[1], [0], [0], [1], [0, 0, 1, 1], [], []>} : vector<64x4xf32>, vector<4x4xf32>, vector<64x4xf32> -> vector<64x4xf32>
    %79 = arith.addf %74, %78 : vector<64x4xf32>
    %80 = vector.extract_strided_slice %39 {offsets = [0, 0], sizes = [64, 4], strides = [1, 1]} : vector<96x4xf32> to vector<64x4xf32>
    %c1 = arith.constant 1 : index
    %c0_37 = arith.constant 0 : index
    %c0_38 = arith.constant 0 : index
    %81 = vector.load %arg8[%c1, %c0_37, %c0_38] : memref<9x4x4xf32, #tpu.memory_space<vmem>>, vector<1x4x4xf32>
    %82 = vector.shape_cast %81 : vector<1x4x4xf32> to vector<4x4xf32>
    %cst_39 = arith.constant dense<0.000000e+00> : vector<64x4xf32>
    %83 = tpu.matmul %80, %82, %cst_39 {dimension_numbers = #tpu.dot_dimension_numbers<[1], [0], [0], [1], [0, 0, 1, 1], [], []>} : vector<64x4xf32>, vector<4x4xf32>, vector<64x4xf32> -> vector<64x4xf32>
    %84 = arith.addf %79, %83 : vector<64x4xf32>
    %85 = vector.extract_strided_slice %73 {offsets = [0, 0], sizes = [64, 4], strides = [1, 1]} : vector<96x4xf32> to vector<64x4xf32>
    %c2 = arith.constant 2 : index
    %c0_40 = arith.constant 0 : index
    %c0_41 = arith.constant 0 : index
    %86 = vector.load %arg8[%c2, %c0_40, %c0_41] : memref<9x4x4xf32, #tpu.memory_space<vmem>>, vector<1x4x4xf32>
    %87 = vector.shape_cast %86 : vector<1x4x4xf32> to vector<4x4xf32>
    %cst_42 = arith.constant dense<0.000000e+00> : vector<64x4xf32>
    %88 = tpu.matmul %85, %87, %cst_42 {dimension_numbers = #tpu.dot_dimension_numbers<[1], [0], [0], [1], [0, 0, 1, 1], [], []>} : vector<64x4xf32>, vector<4x4xf32>, vector<64x4xf32> -> vector<64x4xf32>
    %89 = arith.addf %84, %88 : vector<64x4xf32>
    %90 = vector.extract_strided_slice %67 {offsets = [16, 0], sizes = [64, 4], strides = [1, 1]} : vector<96x4xf32> to vector<64x4xf32>
    %c3 = arith.constant 3 : index
    %c0_43 = arith.constant 0 : index
    %c0_44 = arith.constant 0 : index
    %91 = vector.load %arg8[%c3, %c0_43, %c0_44] : memref<9x4x4xf32, #tpu.memory_space<vmem>>, vector<1x4x4xf32>
    %92 = vector.shape_cast %91 : vector<1x4x4xf32> to vector<4x4xf32>
    %cst_45 = arith.constant dense<0.000000e+00> : vector<64x4xf32>
    %93 = tpu.matmul %90, %92, %cst_45 {dimension_numbers = #tpu.dot_dimension_numbers<[1], [0], [0], [1], [0, 0, 1, 1], [], []>} : vector<64x4xf32>, vector<4x4xf32>, vector<64x4xf32> -> vector<64x4xf32>
    %94 = arith.addf %89, %93 : vector<64x4xf32>
    %95 = vector.extract_strided_slice %39 {offsets = [16, 0], sizes = [64, 4], strides = [1, 1]} : vector<96x4xf32> to vector<64x4xf32>
    %c4 = arith.constant 4 : index
    %c0_46 = arith.constant 0 : index
    %c0_47 = arith.constant 0 : index
    %96 = vector.load %arg8[%c4, %c0_46, %c0_47] : memref<9x4x4xf32, #tpu.memory_space<vmem>>, vector<1x4x4xf32>
    %97 = vector.shape_cast %96 : vector<1x4x4xf32> to vector<4x4xf32>
    %cst_48 = arith.constant dense<0.000000e+00> : vector<64x4xf32>
    %98 = tpu.matmul %95, %97, %cst_48 {dimension_numbers = #tpu.dot_dimension_numbers<[1], [0], [0], [1], [0, 0, 1, 1], [], []>} : vector<64x4xf32>, vector<4x4xf32>, vector<64x4xf32> -> vector<64x4xf32>
    %99 = arith.addf %94, %98 : vector<64x4xf32>
    %100 = vector.extract_strided_slice %73 {offsets = [16, 0], sizes = [64, 4], strides = [1, 1]} : vector<96x4xf32> to vector<64x4xf32>
    %c5 = arith.constant 5 : index
    %c0_49 = arith.constant 0 : index
    %c0_50 = arith.constant 0 : index
    %101 = vector.load %arg8[%c5, %c0_49, %c0_50] : memref<9x4x4xf32, #tpu.memory_space<vmem>>, vector<1x4x4xf32>
    %102 = vector.shape_cast %101 : vector<1x4x4xf32> to vector<4x4xf32>
    %cst_51 = arith.constant dense<0.000000e+00> : vector<64x4xf32>
    %103 = tpu.matmul %100, %102, %cst_51 {dimension_numbers = #tpu.dot_dimension_numbers<[1], [0], [0], [1], [0, 0, 1, 1], [], []>} : vector<64x4xf32>, vector<4x4xf32>, vector<64x4xf32> -> vector<64x4xf32>
    %104 = arith.addf %99, %103 : vector<64x4xf32>
    %105 = vector.extract_strided_slice %67 {offsets = [32, 0], sizes = [64, 4], strides = [1, 1]} : vector<96x4xf32> to vector<64x4xf32>
    %c6 = arith.constant 6 : index
    %c0_52 = arith.constant 0 : index
    %c0_53 = arith.constant 0 : index
    %106 = vector.load %arg8[%c6, %c0_52, %c0_53] : memref<9x4x4xf32, #tpu.memory_space<vmem>>, vector<1x4x4xf32>
    %107 = vector.shape_cast %106 : vector<1x4x4xf32> to vector<4x4xf32>
    %cst_54 = arith.constant dense<0.000000e+00> : vector<64x4xf32>
    %108 = tpu.matmul %105, %107, %cst_54 {dimension_numbers = #tpu.dot_dimension_numbers<[1], [0], [0], [1], [0, 0, 1, 1], [], []>} : vector<64x4xf32>, vector<4x4xf32>, vector<64x4xf32> -> vector<64x4xf32>
    %109 = arith.addf %104, %108 : vector<64x4xf32>
    %110 = vector.extract_strided_slice %39 {offsets = [32, 0], sizes = [64, 4], strides = [1, 1]} : vector<96x4xf32> to vector<64x4xf32>
    %c7 = arith.constant 7 : index
    %c0_55 = arith.constant 0 : index
    %c0_56 = arith.constant 0 : index
    %111 = vector.load %arg8[%c7, %c0_55, %c0_56] : memref<9x4x4xf32, #tpu.memory_space<vmem>>, vector<1x4x4xf32>
    %112 = vector.shape_cast %111 : vector<1x4x4xf32> to vector<4x4xf32>
    %cst_57 = arith.constant dense<0.000000e+00> : vector<64x4xf32>
    %113 = tpu.matmul %110, %112, %cst_57 {dimension_numbers = #tpu.dot_dimension_numbers<[1], [0], [0], [1], [0, 0, 1, 1], [], []>} : vector<64x4xf32>, vector<4x4xf32>, vector<64x4xf32> -> vector<64x4xf32>
    %114 = arith.addf %109, %113 : vector<64x4xf32>
    %115 = vector.extract_strided_slice %73 {offsets = [32, 0], sizes = [64, 4], strides = [1, 1]} : vector<96x4xf32> to vector<64x4xf32>
    %c8 = arith.constant 8 : index
    %c0_58 = arith.constant 0 : index
    %c0_59 = arith.constant 0 : index
    %116 = vector.load %arg8[%c8, %c0_58, %c0_59] : memref<9x4x4xf32, #tpu.memory_space<vmem>>, vector<1x4x4xf32>
    %117 = vector.shape_cast %116 : vector<1x4x4xf32> to vector<4x4xf32>
    %cst_60 = arith.constant dense<0.000000e+00> : vector<64x4xf32>
    %118 = tpu.matmul %115, %117, %cst_60 {dimension_numbers = #tpu.dot_dimension_numbers<[1], [0], [0], [1], [0, 0, 1, 1], [], []>} : vector<64x4xf32>, vector<4x4xf32>, vector<64x4xf32> -> vector<64x4xf32>
    %119 = arith.addf %114, %118 : vector<64x4xf32>
    %c0_61 = arith.constant 0 : index
    %c0_62 = arith.constant 0 : index
    %120 = vector.load %arg9[%c0_61, %c0_62] : memref<1x4xf32, #tpu.memory_space<vmem>>, vector<1x4xf32>
    %121 = vector.broadcast %120 : vector<1x4xf32> to vector<64x4xf32>
    %122 = arith.mulf %119, %121 : vector<64x4xf32>
    %c0_63 = arith.constant 0 : index
    %c0_64 = arith.constant 0 : index
    %123 = vector.load %arg10[%c0_63, %c0_64] : memref<1x4xf32, #tpu.memory_space<vmem>>, vector<1x4xf32>
    %124 = vector.broadcast %123 : vector<1x4xf32> to vector<64x4xf32>
    %125 = arith.addf %122, %124 : vector<64x4xf32>
    %cst_65 = arith.constant 0.000000e+00 : f32
    %126 = vector.broadcast %cst_65 : f32 to vector<64x4xf32>
    %127 = arith.maximumf %125, %126 : vector<64x4xf32>
    %c0_66 = arith.constant 0 : index
    %c0_67 = arith.constant 0 : index
    %128 = vector.load %arg11[%c0_66, %c0_67] : memref<4x16xf32, #tpu.memory_space<vmem>>, vector<4x16xf32>
    %cst_68 = arith.constant dense<0.000000e+00> : vector<64x16xf32>
    %129 = tpu.matmul %127, %128, %cst_68 {dimension_numbers = #tpu.dot_dimension_numbers<[1], [0], [0], [1], [0, 0, 1, 1], [], []>} : vector<64x4xf32>, vector<4x16xf32>, vector<64x16xf32> -> vector<64x16xf32>
    %c0_69 = arith.constant 0 : index
    %c0_70 = arith.constant 0 : index
    %130 = vector.load %arg12[%c0_69, %c0_70] : memref<1x16xf32, #tpu.memory_space<vmem>>, vector<1x16xf32>
    %131 = vector.broadcast %130 : vector<1x16xf32> to vector<64x16xf32>
    %132 = arith.mulf %129, %131 : vector<64x16xf32>
    %c0_71 = arith.constant 0 : index
    %c0_72 = arith.constant 0 : index
    %133 = vector.load %arg13[%c0_71, %c0_72] : memref<1x16xf32, #tpu.memory_space<vmem>>, vector<1x16xf32>
    %134 = vector.broadcast %133 : vector<1x16xf32> to vector<64x16xf32>
    %135 = arith.addf %132, %134 : vector<64x16xf32>
    %c0_73 = arith.constant 0 : index
    %c0_74 = arith.constant 0 : index
    %c0_75 = arith.constant 0 : index
    %c0_76 = arith.constant 0 : index
    %136 = vector.load %arg3[%c0_73, %c0_74, %c0_75, %c0_76] : memref<1x4x16x16xf32, #tpu.memory_space<vmem>>, vector<1x4x16x16xf32>
    %137 = vector.shape_cast %136 : vector<1x4x16x16xf32> to vector<4x16x16xf32>
    %138 = vector.shape_cast %137 : vector<4x16x16xf32> to vector<64x16xf32>
    %139 = arith.addf %135, %138 : vector<64x16xf32>
    %cst_77 = arith.constant 0.000000e+00 : f32
    %140 = vector.broadcast %cst_77 : f32 to vector<64x16xf32>
    %141 = arith.maximumf %139, %140 : vector<64x16xf32>
    %142 = vector.shape_cast %141 : vector<64x16xf32> to vector<1x64x16xf32>
    %c0_78 = arith.constant 0 : index
    %c0_79 = arith.constant 0 : index
    %c0_80 = arith.constant 0 : index
    %143 = vector.load %arg14[%c0_78, %c0_79, %c0_80] : memref<1x64x16xf32, #tpu.memory_space<vmem>>, vector<1x64x16xf32>
    tpu.vector_store %arg14[%c0_78, %c0_79, %c0_80], %142 {strides = array<i32>} : memref<1x64x16xf32, #tpu.memory_space<vmem>>, vector<1x64x16xf32>,
    return
  }
  func.func @transform_0(%arg0: i32, %arg1: i32) -> (i32, i32, i32, i32) {
    %c4_i32 = arith.constant 4 : i32
    %0 = arith.muli %arg1, %c4_i32 : i32
    %c1_i32 = arith.constant 1 : i32
    %1 = arith.subi %0, %c1_i32 : i32
    %c0_i32 = arith.constant 0 : i32
    %2 = arith.maxsi %1, %c0_i32 : i32
    %c0_i32_0 = arith.constant 0 : i32
    %c0_i32_1 = arith.constant 0 : i32
    %c0_i32_2 = arith.constant 0 : i32
    return %arg0, %2, %c0_i32_0, %c0_i32_1 : i32, i32, i32, i32
  }
  func.func @transform_1(%arg0: i32, %arg1: i32) -> (i32, i32, i32, i32) {
    %c0_i32 = arith.constant 0 : i32
    %c0_i32_0 = arith.constant 0 : i32
    %c0_i32_1 = arith.constant 0 : i32
    return %arg0, %arg1, %c0_i32, %c0_i32_0 : i32, i32, i32, i32
  }
  func.func @transform_2(%arg0: i32, %arg1: i32) -> (i32, i32, i32, i32) {
    %c1_i32 = arith.constant 1 : i32
    %0 = arith.addi %arg1, %c1_i32 : i32
    %c4_i32 = arith.constant 4 : i32
    %1 = arith.muli %0, %c4_i32 : i32
    %c15_i32 = arith.constant 15 : i32
    %2 = arith.minsi %1, %c15_i32 : i32
    %c0_i32 = arith.constant 0 : i32
    %c0_i32_0 = arith.constant 0 : i32
    %c0_i32_1 = arith.constant 0 : i32
    return %arg0, %2, %c0_i32, %c0_i32_0 : i32, i32, i32, i32
  }
  func.func @transform_3(%arg0: i32, %arg1: i32) -> (i32, i32) {
    %c0_i32 = arith.constant 0 : i32
    %c0_i32_0 = arith.constant 0 : i32
    %c0_i32_1 = arith.constant 0 : i32
    return %c0_i32, %c0_i32_0 : i32, i32
  }
  func.func @transform_4(%arg0: i32, %arg1: i32) -> (i32, i32) {
    %c0_i32 = arith.constant 0 : i32
    %c0_i32_0 = arith.constant 0 : i32
    %c0_i32_1 = arith.constant 0 : i32
    return %c0_i32, %c0_i32_0 : i32, i32
  }
  func.func @transform_5(%arg0: i32, %arg1: i32) -> (i32, i32) {
    %c0_i32 = arith.constant 0 : i32
    %c0_i32_0 = arith.constant 0 : i32
    %c0_i32_1 = arith.constant 0 : i32
    return %c0_i32, %c0_i32_0 : i32, i32
  }
  func.func @transform_6(%arg0: i32, %arg1: i32) -> (i32, i32, i32) {
    %c0_i32 = arith.constant 0 : i32
    %c0_i32_0 = arith.constant 0 : i32
    %c0_i32_1 = arith.constant 0 : i32
    %c0_i32_2 = arith.constant 0 : i32
    return %c0_i32, %c0_i32_0, %c0_i32_1 : i32, i32, i32
  }
  func.func @transform_7(%arg0: i32, %arg1: i32) -> (i32, i32) {
    %c0_i32 = arith.constant 0 : i32
    %c0_i32_0 = arith.constant 0 : i32
    %c0_i32_1 = arith.constant 0 : i32
    return %c0_i32, %c0_i32_0 : i32, i32
  }
  func.func @transform_8(%arg0: i32, %arg1: i32) -> (i32, i32) {
    %c0_i32 = arith.constant 0 : i32
    %c0_i32_0 = arith.constant 0 : i32
    %c0_i32_1 = arith.constant 0 : i32
    return %c0_i32, %c0_i32_0 : i32, i32
  }
  func.func @transform_9(%arg0: i32, %arg1: i32) -> (i32, i32) {
    %c0_i32 = arith.constant 0 : i32
    %c0_i32_0 = arith.constant 0 : i32
    %c0_i32_1 = arith.constant 0 : i32
    return %c0_i32, %c0_i32_0 : i32, i32
  }
  func.func @transform_10(%arg0: i32, %arg1: i32) -> (i32, i32) {
    %c0_i32 = arith.constant 0 : i32
    %c0_i32_0 = arith.constant 0 : i32
    %c0_i32_1 = arith.constant 0 : i32
    return %c0_i32, %c0_i32_0 : i32, i32
  }
  func.func @transform_11(%arg0: i32, %arg1: i32) -> (i32, i32) {
    %c0_i32 = arith.constant 0 : i32
    %c0_i32_0 = arith.constant 0 : i32
    %c0_i32_1 = arith.constant 0 : i32
    return %c0_i32, %c0_i32_0 : i32, i32
  }
  func.func @transform_12(%arg0: i32, %arg1: i32) -> (i32, i32, i32) {
    %c0_i32 = arith.constant 0 : i32
    %c0_i32_0 = arith.constant 0 : i32
    return %arg0, %arg1, %c0_i32 : i32, i32, i32
  }
}

</mosaic_0001>

<bundles_post_ra>
// kernel: bottleneck_forward.1
= control target key start
LH: loop header
LB: loop body
LE: loop exit
PB: predicated region body
PF: predicated region fallthrough
CT: control target
= control target key end

     0   :  { %s3380_s21 = smov 0   ;;  %s3382_s22 = smov 0   ;;  %s3965_s0 = inlined_call_operand.vmem [shape: f32[2,16,16,16], index: 0, kind: input, shape index: {}, may-alias: {0,1,2}]   ;;  %s3966_s1 = inlined_call_operand.vmem [shape: f32[2,16,16,16], index: 1, kind: input, shape index: {}, may-alias: {0,1,2}]   ;;  %s3967_s2 = inlined_call_operand.vmem [shape: f32[2,16,16,16], index: 2, kind: input, shape index: {}, may-alias: {0,1,2}]   ;;  %s3968_s3 = inlined_call_operand.vmem [shape: f32[16,4], index: 3, kind: input, shape index: {}]   ;;  %s3969_s4 = inlined_call_operand.vmem [shape: f32[1,4], index: 4, kind: input, shape index: {}]   ;;  %s3970_s5 = inlined_call_operand.vmem [shape: f32[1,4], index: 5, kind: input, shape index: {}]   ;;  %s3971_s6 = inlined_call_operand.vmem [shape: f32[9,4,4], index: 6, kind: input, shape index: {}]   ;;  %s3972_s7 = inlined_call_operand.vmem [shape: f32[1,4], index: 7, kind: input, shape index: {}]   ;;  %s3973_s8 = inlined_call_operand.vmem [shape: f32[1,4], index: 8, kind: input, shape index: {}]   ;;  %s3974_s9 = inlined_call_operand.vmem [shape: f32[4,16], index: 9, kind: input, shape index: {}]   ;;  %s3975_s10 = inlined_call_operand.vmem [shape: f32[1,16], index: 10, kind: input, shape index: {}]   ;;  %s3976_s11 = inlined_call_operand.vmem [shape: f32[1,16], index: 11, kind: input, shape index: {}]   ;;  %s3977_s12 = inlined_call_operand.vmem [shape: f32[2,256,16], index: 12, kind: output, shape index: {}]  }
   0x1   :  { %s3384_s23 = smov 0   ;;  %s3386_s24 = smov 0  }
   0x2   :  { %s3388_s25 = smov 0  }
   0x3 LB: > { %s31_s26 = sadd.s32 1, %s3305_s23  ;;  %s34_s27 = sadd.s32 1, %s3309_s24  ;;  %s3313_s25 = sphi %s3388_s25, %s22_s25   ;;  %s3309_s24 = sphi %s3386_s24, %s4026_s24   ;;  %s3305_s23 = sphi %s3384_s23, %s4025_s23   ;;  %s3301_s22 = sphi %s3382_s22, %s4024_s22   ;;  %s3297_s21 = sphi %s3380_s21, %s4023_s21  }
   0x4   : > { %p32_p0 = scmp.ge.s32.totalorder %s31_s26, 4  ;;  %p2800_p1 = scmp.ge.s32.totalorder %s3313_s25, 1 }
   0x5   : > { %p448_p2 = scmp.lt.s32.totalorder %s3313_s25, 9 }
   0x6   : > { %s4028_s26 = smov (%p32_p0, %s31_s26), 0  ;;  %s4030_s27 = smov (!%p32_p0, %s34_s27), %s3309_s24 }
   0x7   : > { %p449_p3 = pnand %p2800_p1, %p448_p2  ;;  %p36_p4 = scmp.ge.s32.totalorder %s4030_s27, 2 }
   0x9   : > { %s4032_s27 = smov (%p36_p4, %s4030_s27), 0  ;;  %452 = sbr.rel (%p449_p3) target bundleno = 717 (0x2cd), region = 68 }
   0xe   : > { %v581_v0 = vld [vmem:[%s3968_s3 + $0x8] sm:$0xff]  ;;  %v580_v1 = vld [vmem:[%s3968_s3] sm:$0xff]  ;;  %s3419_s14 = sshll.u32 %s3297_s21, 2  ;;  %p529_p5 = scmp.lt.s32.totalorder %s3301_s22, 1  ;;  %vm592_vm0 = vcmask 130048   ;;  %vm1307_vm1 = vcmask 1043456   ;;  %v948_v22 = vlaneseq }
   0xf   : > { %3229 = vmatprep.subr.mxu1 %v581_v0  ;;  %3059 = vmatprep.subr.mxu0 %v581_v0  ;;  %p545_p6 = scmp.lt.s32.totalorder %s3419_s14, 15  ;;  %s2802_s18 = sadd.s32 4294967295, %s3419_s14  ;;  %v2839_v14 = vld [vmem:[%s3971_s6 + $0x4] sm:$0xf]  ;;  %v1287_v15 = vld [vmem:[%s3971_s6] sm:$0xf] }
  0x10   : > { %3231 = vmatpush3.msra.mxu1 %v581_v0  ;;  %3060 = vmatpush3.msra.mxu0 %v581_v0  ;;  %s4034_s22 = smov (!%p529_p5, %s3301_s22), 1  ;;  %p527_p7 = scmp.gt.s32.totalorder %s2802_s18, 0  ;;  %v3499_v16 = vld [vmem:[%s3971_s6 + $0x8] sm:$0xf]  ;;  %v3507_v17 = vld [vmem:[%s3971_s6 + $0xc] sm:$0xf] }
  0x11   : > { %3230 = vmatprep.subr.mxu1 %v580_v1  ;;  %3061 = vmatprep.subr.mxu0 %v580_v1  ;;  %s546_s15 = scalar_select %p545_p6, %s3419_s14, 15  ;;  %v3517_v23 = vld [vmem:[%s3969_s4] ss:$0 sm:$0xff]  ;;  %v3522_v27 = vshrl.u32 %v948_v22, 7  ;;  %vm1290_vm3 = vcmask 31744   ;;  %vm1117_vm4 = vcmask 1040384  }
  0x12   : > { %3232 = vmatpush3.msra.mxu1 %v580_v1  ;;  %3062 = vmatpush3.msra.mxu0 %v580_v1  ;;  %s3423_s16 = sshll.u32 %s4034_s22, 5  ;;  %s2950_s22 = sadd.s32 4, %s3419_s14  ;;  %v3527_v28 = vld [vmem:[%s3970_s5] ss:$0 sm:$0xff]  ;;  %vm1154_vm9 = vcmask 1046528  }
  0x13   : > { %s2812_s17 = sshll.u32 %s546_s15, 1  ;;  %3075 = vmatprep.subr.mxu1 %v581_v0  ;;  %p2803_p8 = scmp.lt.s32.totalorder %s2802_s18, 15  ;;  %3103 = vmatprep.subr.msk.mxu0 %vm1307_vm1, %v1287_v15  ;;  %v951_v38 = vadd.s32 16, %v3522_v27  ;;  %v965_v48 = vand.u32 15, %v3522_v27  ;;  %v953_v50 = vadd.s32 32, %v3522_v27 }
  0x14   : > { %s549_s19 = sadd.s32 %s2812_s17, %s3423_s16  ;;  %s4036_s18 = smov (!%p527_p7, %s2802_s18), 0 }
  0x15   : > { %s2814_s20 = sshll.u32 %s549_s19, 3  ;;  %p3450_p9 = scmp.lt.s32.totalorder %s2950_s22, 15  ;;  %v979_v49 = vand.u32 15, %v951_v38  ;;  %vm3560_vm5 = vcmp.eq.s32.totalorder %v965_v48, 0  ;;  %v993_v63 = vand.u32 15, %v953_v50 }
  0x16   : > { %s3430_s30 = scalar_lea.vmem %s3966_s1, %s2814_s20  ;;  %s4038_s18 = smov (!%p2803_p8, %s4036_s18), 15 }
  0x17   : > { %v3434_v2 = vld [vmem:[%s3430_s30] sm:$0xff]  ;;  %v590_v3 = vld [vmem:[%s3430_s30 + $0x30] sm:$0xff]  ;;  %v3438_v4 = vld [vmem:[%s3430_s30 + $0x8] sm:$0xff]  ;;  %s4040_s22 = smov (!%p3450_p9, %s2950_s22), 15  ;;  %s2808_s14 = sshll.u32 %s4038_s18, 1  ;;  %vm3564_vm6 = vcmp.eq.s32.totalorder %v979_v49, 0 }
  0x18   : > { %3984 = vst [vmem:[#allocation2_spill] sm:$0xff] %v3434_v2  ;;  %3985 = vst [vmem:[#allocation3_spill] sm:$0xff] %v3438_v4  ;;  %3063 = vmatprep.mubr.msk.f32.mxu0 %vm592_vm0, %v3434_v2  ;;  %3072 = vmatprep.mubr.msk.f32.mxu1 %vm592_vm0, %v590_v3  ;;  %v591_v5 = vld [vmem:[%s3430_s30 + $0x38] sm:$0xff]  ;;  %v3445_v6 = vld [vmem:[%s3430_s30 + $0x10] sm:$0xff]  ;;  %s535_s15 = sadd.s32 %s3423_s16, %s2808_s14  ;;  %s4042_s22 = smov (!%p3450_p9, %s4040_s22), 15  ;;  %vm3601_vm7 = vcmp.eq.s32.totalorder %v993_v63, 0 }
  0x19   : > { %3986 = vst [vmem:[#allocation4_spill] sm:$0xff] %v3445_v6  ;;  %3064 = vmatmul.mubr.msk.f32.vlgmr.msra.gmra.mxu0 %vm592_vm0, %v3438_v4  ;;  %3073 = vmatmul.mubr.msk.f32.vlgmr.msra.gmra.mxu1 %vm592_vm0, %v591_v5  ;;  %v3457_v7 = vld [vmem:[%s3430_s30 + $0x18] sm:$0xff]  ;;  %v3460_v8 = vld [vmem:[%s3430_s30 + $0x20] sm:$0xff]  ;;  %v3470_v9 = vld [vmem:[%s3430_s30 + $0x28] sm:$0xff]  ;;  %s2810_s17 = sshll.u32 %s535_s15, 3  ;;  %s2819_s18 = sshll.u32 %s4042_s22, 1 }
  0x1a   : > { %3076 = vmatpush3.msra.mxu1 %v581_v0  ;;  %3066 = vmatprep.mubr.msk.f32.mxu0 %vm592_vm0, %v3445_v6  ;;  %3988 = vst [vmem:[#allocation5_spill] sm:$0xff] %v3457_v7  ;;  %3989 = vst [vmem:[#allocation6_spill] sm:$0xff] %v3460_v8  ;;  %s537_s28 = scalar_lea.vmem %s3965_s0, %s2810_s17  ;;  %s563_s29 = sadd.s32 %s2819_s18, %s3423_s16 }
  0x1b   : > { %3077 = vmatprep.subr.mxu1 %v580_v1  ;;  %3990 = vst [vmem:[#allocation7_spill] sm:$0xff] %v3470_v9  ;;  %v758_v10 = vld [vmem:[%s537_s28] sm:$0xff]  ;;  %v759_v11 = vld [vmem:[%s537_s28 + $0x8] sm:$0xff]  ;;  %s2821_s14 = sshll.u32 %s563_s29, 3  ;;  %3104 = vmatpush3.msk.msra.mxu0 %vm1307_vm1, %v1287_v15  ;;  %p936_p10 = scmp.eq.s32.totalorder %s3297_s21, 0 }
  0x1c   : > { %3078 = vmatpush3.msra.mxu1 %v580_v1  ;;  %3079 = vmatprep.mubr.msk.f32.mxu1 %vm592_vm0, %v758_v10  ;;  %s565_s17 = scalar_lea.vmem %s3967_s2, %s2821_s14  ;;  %v955_v10 = vadd.s32 48, %v3522_v27  ;;  %p942_p11 = scmp.eq.s32.totalorder %s3297_s21, 3 }
  0x1d   : > { %3067 = vmatmul.mubr.msk.f32.gmra.mxu0 %vm592_vm0, %v3457_v7  ;;  %3082 = vmatprep.subr.mxu1 %v581_v0  ;;  %v847_v12 = vld [vmem:[%s565_s17] sm:$0xff]  ;;  %v848_v13 = vld [vmem:[%s565_s17 + $0x8] sm:$0xff]  ;;  %s937_s13 = scalar_select %p936_p10, 1, 0 }
  0x1e   : > { %3069 = vmatprep.mubr.msk.f32.mxu0 %vm592_vm0, %v3460_v8  ;;  %3080 = vmatmul.mubr.msk.f32.vlgmr.msra.gmra.mxu1 %vm592_vm0, %v759_v11  ;;  %v1007_v22 = vand.u32 15, %v955_v10  ;;  %s943_s20 = scalar_select %p942_p11, 1, 0 }
  0x1f   : > { %3083 = vmatpush3.msra.mxu1 %v581_v0  ;;  %3086 = vmatprep.mubr.msk.f32.mxu1 %vm592_vm0, %v847_v12  ;;  %v938_v36 = vstv %s937_s13  ;;  %v3571_v0 = vld [vmem:[%s3971_s6 + $0x10] sm:$0xf]  ;;  %s2822_s13 = sshll.u32 %s3297_s21, 3 }
  0x20   : > { %3084 = vmatprep.subr.mxu1 %v580_v1  ;;  %3131 = vmatprep.subr.msk.mxu0 %vm1307_vm1, %v3507_v17  ;;  %vm939_vm2 = vcmp.eq.s32.totalorder %v938_v36, 1  ;;  %vm1197_vm8 = vcmp.eq.s32.totalorder %v1007_v22, 0  ;;  %p573_p12 = scmp.lt.s32.totalorder %s2822_s13, 31 }
  0x21   : > { %3070 = vmatmul.mubr.msk.f32.gmra.mxu0 %vm592_vm0, %v3470_v9  ;;  %3085 = vmatpush3.msra.mxu1 %v580_v1 }
  0x22   : > { %3087 = vmatmul.mubr.msk.f32.vlgmr.msra.gmra.mxu1 %vm592_vm0, %v848_v13  ;;  %3089 = vmatprep.subr.msk.mxu1 %vm1307_vm1, %v2839_v14  ;;  %s4044_s13 = smov (!%p573_p12, %s2822_s13), 31 }
  0x23   : > { %3090 = vmatpush3.msk.msra.mxu1 %vm1307_vm1, %v2839_v14  ;;  %s576_s28 = sadd.s32 %s3423_s16, %s4044_s13 }
  0x24   : > { %3117 = vmatprep.subr.msk.mxu1 %vm1307_vm1, %v3499_v16  ;;  %s2824_s14 = sshll.u32 %s576_s28, 3 }
  0x25   : > { %s3925_s19 = scalar_lea.vmem %s3977_s12, %s2824_s14 }
  0xd9   : > { %v3065_v18 = vpop.f32.mrf.mxu0  ;;  %v3511_v19 = vpop.f32.mrf.mxu1 }
  0xda   : > { %v729_v29 = vmul.f32 %v3065_v18, %v3517_v23  ;;  %v950_v18 = vadd.s32 8, %v3522_v27 }
  0xdb   : > { %v683_v20 = vpop.f32.mrf.mxu0  ;;  %v3520_v25 = vpop.f32.mrf.mxu1 }
  0xdc   : > { %v728_v24 = vmul.f32 %v3517_v23, %v683_v20  ;;  %v743_v39 = vadd.f32 %v3527_v28, %v729_v29 }
  0xdd   : > { %v3068_v21 = vpop.f32.mrf.mxu0 }
  0xde   : > { %v742_v31 = vadd.f32 %v3527_v28, %v728_v24  ;;  %v3081_v32 = vpop.f32.mrf.mxu1  ;;  %v731_v40 = vmul.f32 %v3068_v21, %v3517_v23  ;;  %v3545_v51 = vmax.f32 %v743_v39, 0.0  ;;  %v3608_v24 = vld [vmem:[%s3971_s6 + $0x14] sm:$0xf] }
  0xdf   : > { %v693_v26 = vpop.f32.mrf.mxu0  ;;  %v842_v34 = vmul.f32 %v3081_v32, %v3517_v23  ;;  %v972_v32 = vand.u32 15, %v950_v18  ;;  %v2908_v18 = vld [vmem:[%s3971_s6 + $0x1c] sm:$0xf] }
  0xe0   : > { %v730_v33 = vmul.f32 %v3517_v23, %v693_v26  ;;  %v832_v37 = vpop.f32.mrf.mxu1  ;;  %v3538_v43 = vmax.f32 %v742_v31, 0.0  ;;  %v745_v52 = vadd.f32 %v3527_v28, %v731_v40  ;;  %v1123_v5 = vrot.slane %v3545_v51, 7 }
  0xe1   : > { %v3071_v30 = vpop.f32.mrf.mxu0  ;;  %v844_v41 = vadd.f32 %v3527_v28, %v842_v34  ;;  %v841_v42 = vmul.f32 %v3517_v23, %v832_v37  ;;  %v952_v34 = vadd.s32 24, %v3522_v27  ;;  %v734_v40 = vmul.f32 %v3517_v23, %v3520_v25 }
  0xe2   : > { %v744_v44 = vadd.f32 %v3527_v28, %v730_v33  ;;  %v1121_v58 = vrot.slane %v3538_v43, 7  ;;  %v3573_v1 = vmax.f32 %v745_v52, 0.0  ;;  %v733_v3 = vmul.f32 %v3071_v30, %v3517_v23 }
  0xe3   : > { %v703_v35 = vpop.f32.mrf.mxu0  ;;  %v846_v46 = vmax.f32 %v844_v41, 0.0  ;;  %v843_v47 = vadd.f32 %v3527_v28, %v841_v42  ;;  %vm3642_vm10 = vcmp.eq.s32.totalorder %v972_v32, 15  ;;  %v748_v52 = vadd.f32 %v3527_v28, %v734_v40  ;;  %v2918_v41 = vld [vmem:[%s3971_s6 + $0x20] sm:$0xf] }
  0xe4   : > { %v732_v45 = vmul.f32 %v3517_v23, %v703_v35  ;;  %v3550_v55 = vmax.f32 %v744_v44, 0.0  ;;  %v747_v26 = vadd.f32 %v3527_v28, %v733_v3  ;;  %v1127_v30 = vrot.slane %v3573_v1, 7 }
  0xe5   : > { %v845_v53 = vmax.f32 %v843_v47, 0.0  ;;  %v3548_v54 = vsel %vm939_vm2, 0.0, %v846_v46  ;;  %v1124_v33 = vsel %vm1117_vm4, %v1121_v58, %v1123_v5  ;;  %v1158_v35 = vrot.slane %v3538_v43, 1 }
  0xe6   : > { %v746_v56 = vadd.f32 %v3527_v28, %v732_v45  ;;  %v1119_v57 = vrot.slane %v3548_v54, 7  ;;  %v1125_v14 = vrot.slane %v3550_v55, 7  ;;  %v1156_v37 = vrot.slane %v3548_v54, 1 }
  0xe7   : > { %v3555_v59 = vsel %vm939_vm2, 0.0, %v845_v53  ;;  %v3633_v38 = vmax.f32 %v747_v26, 0.0  ;;  %v1160_v44 = vrot.slane %v3545_v51, 1  ;;  %v986_v45 = vand.u32 15, %v952_v34 }
  0xe8   : > { %v1118_v60 = vrot.slane %v3555_v59, 7  ;;  %3091 = vmatprep.mubr.msk.f32.mxu1 %vm1290_vm3, %v3555_v59  ;;  %v3580_v11 = vmax.f32 %v746_v56, 0.0  ;;  %v1122_v13 = vsel %vm1117_vm4, %v1119_v57, %v1121_v58  ;;  %v1126_v29 = vsel %vm1117_vm4, %v1123_v5, %v1125_v14 }
  0xe9   : > { %3092 = vmatmul.mubr.msk.f32.vlgmr.msra.gmra.mxu1 %vm1290_vm3, %v3548_v54  ;;  %v1229_v20 = vsel %vm3564_vm6, 0.0, %v1122_v13  ;;  %v1155_v36 = vrot.slane %v3555_v59, 1  ;;  %v3647_v42 = vsel %vm1117_vm4, %v1125_v14, %v1127_v30  ;;  %v954_v46 = vadd.s32 40, %v3522_v27  ;;  %v2898_v59 = vld [vmem:[%s3971_s6 + $0x18] sm:$0xf] }
  0xea   : > { %3118 = vmatpush3.msk.msra.mxu1 %vm1307_vm1, %v3499_v16  ;;  %3094 = vmatprep.mubr.msk.f32.mxu1 %vm1290_vm3, %v3538_v43  ;;  %v1153_v12 = vsel %vm1117_vm4, 0.0, %v1118_v60  ;;  %v1120_v16 = vsel %vm1117_vm4, %v1118_v60, %v1119_v57  ;;  %v1129_v31 = vrot.slane %v3580_v11, 7  ;;  %v1159_v48 = vsel %vm1154_vm9, %v1156_v37, %v1158_v35 }
  0xeb   : > { %v1227_v15 = vsel %vm3560_vm5, 0.0, %v1153_v12  ;;  %3145 = vmatprep.subr.msk.mxu1 %vm1307_vm1, %v3571_v0  ;;  %v1157_v47 = vsel %vm1154_vm9, %v1155_v36, %v1156_v37  ;;  %v1162_v49 = vrot.slane %v3550_v55, 1  ;;  %v1131_v50 = vrot.slane %v3633_v38, 7  ;;  %v3088_v12 = vpop.f32.mrf.mxu1 }
  0xec   : > { %3105 = vmatprep.mubr.msk.f32.mxu0 %vm1290_vm3, %v1227_v15  ;;  %v1130_v39 = vsel %vm1117_vm4, %v1127_v30, %v1129_v31  ;;  %v956_v53 = vadd.s32 56, %v3522_v27  ;;  %v1276_v56 = vsel %vm3642_vm10, 0.0, %v1159_v48  ;;  %vm3671_vm11 = vcmp.eq.s32.totalorder %v986_v45, 15 }
  0xed   : > { %3095 = vmatmul.mubr.msk.f32.gmra.mxu1 %vm1290_vm3, %v3545_v51  ;;  %3106 = vmatmul.mubr.msk.f32.vlgmr.msra.gmra.mxu0 %vm1290_vm3, %v1120_v16  ;;  %v3655_v25 = vsel %vm1197_vm8, 0.0, %v1130_v39  ;;  %v3667_v54 = vsel %vm1117_vm4, %v1129_v31, %v1131_v50  ;;  %v1000_v58 = vand.u32 15, %v954_v46  ;;  %v1161_v60 = vsel %vm1154_vm9, %v1158_v35, %v1160_v44  ;;  %v921_v21 = vpop.f32.mrf.mxu1 }
  0xee   : > { %3097 = vmatprep.mubr.msk.f32.mxu1 %vm1290_vm3, %v3550_v55  ;;  %3108 = vmatprep.mubr.msk.f32.mxu0 %vm1290_vm3, %v1229_v20  ;;  %v1163_v61 = vsel %vm1154_vm9, %v1160_v44, %v1162_v49  ;;  %v1164_v62 = vrot.slane %v3573_v1, 1  ;;  %v1166_v63 = vrot.slane %v3580_v11, 1  ;;  %v735_v3 = vmul.f32 %v3511_v19, %v3517_v23 }
  0xef   : > { %3132 = vmatpush3.msk.msra.mxu0 %vm1307_vm1, %v3507_v17  ;;  %v3631_v17 = vsel %vm3601_vm7, 0.0, %v1126_v29  ;;  %v957_v5 = vadd.s32 64, %v3522_v27  ;;  %v3691_v10 = vmax.f32 %v748_v52, 0.0  ;;  %v1278_v13 = vsel %vm3671_vm11, 0.0, %v1163_v61  ;;  %v2468_v61 = vld [vmem:[%s3974_s9] sm:$0xf] }
  0xf0   : > { %3159 = vmatprep.subr.msk.mxu0 %vm1307_vm1, %v3608_v24  ;;  %v1014_v14 = vand.u32 15, %v956_v53  ;;  %v3700_v19 = vsel %vm1154_vm9, %v1162_v49, %v1164_v62  ;;  %vm1244_vm12 = vcmp.eq.s32.totalorder %v1000_v58, 15  ;;  %v1168_v15 = vrot.slane %v3633_v38, 1 }
  0xf1   : > { %3098 = vmatmul.mubr.msk.f32.gmra.mxu1 %vm1290_vm3, %v3573_v1  ;;  %3109 = vmatmul.mubr.msk.f32.gmra.mxu0 %vm1290_vm3, %v1124_v33  ;;  %v749_v16 = vadd.f32 %v3527_v28, %v735_v3  ;;  %v1170_v22 = vrot.slane %v3691_v10, 1  ;;  %v1133_v29 = vrot.slane %v3691_v10, 7  ;;  %v930_v32 = vmul.f32 %v3517_v23, %v921_v21 }
  0xf2   : > { %3100 = vmatprep.mubr.msk.f32.mxu1 %vm1290_vm3, %v3580_v11  ;;  %3111 = vmatprep.mubr.msk.f32.mxu0 %vm1290_vm3, %v3631_v17  ;;  %v3725_v30 = vsel %vm1154_vm9, %v1166_v63, %v1168_v15  ;;  %vm1246_vm13 = vcmp.eq.s32.totalorder %v1014_v14, 15  ;;  %v944_v39 = vstv %s943_s20  ;;  %v931_v46 = vmul.f32 %v3088_v12, %v3517_v23 }
  0xf3   : > { %v1171_v31 = vsel %vm1154_vm9, %v1168_v15, %v1170_v22  ;;  %v932_v36 = vadd.f32 %v3527_v28, %v930_v32  ;;  %vm3759_vm15 = vcmp.eq.s32.totalorder %v944_v39, 1  ;;  %v959_v53 = vadd.s32 80, %v3522_v27 }
  0xf4   : > { %v3738_v34 = vsel %vm1246_vm13, 0.0, %v1171_v31 }
  0xf5   : > { %3101 = vmatmul.mubr.msk.f32.gmra.mxu1 %vm1290_vm3, %v3633_v38  ;;  %3112 = vmatmul.mubr.msk.f32.gmra.mxu0 %vm1290_vm3, %v3647_v42  ;;  %v934_v44 = vmax.f32 %v932_v36, 0.0  ;;  %v1035_v58 = vand.u32 15, %v959_v53 }
  0xf6   : > { %3114 = vmatprep.mubr.msk.f32.mxu0 %vm1290_vm3, %v3655_v25  ;;  %3119 = vmatprep.mubr.msk.f32.mxu1 %vm1290_vm3, %v1157_v47 }
  0xf7   : > { %v946_v45 = vsel %vm3759_vm15, 0.0, %v934_v44  ;;  %vm1201_vm5 = vcmp.eq.s32.totalorder %v1035_v58, 0 }
  0xf8   : > { %v1174_v47 = vrot.slane %v946_v45, 1  ;;  %v1137_v57 = vrot.slane %v946_v45, 7 }
  0xf9   : > { %3115 = vmatmul.mubr.msk.f32.gmra.mxu0 %vm1290_vm3, %v3667_v54  ;;  %3120 = vmatmul.mubr.msk.f32.vlgmr.msra.gmra.mxu1 %vm1290_vm3, %v1276_v56 }
  0xfa   : > { %3146 = vmatpush3.msk.msra.mxu1 %vm1307_vm1, %v3571_v0  ;;  %3122 = vmatprep.mubr.msk.f32.mxu1 %vm1290_vm3, %v1161_v60  ;;  %v1167_v0 = vsel %vm1154_vm9, %v1164_v62, %v1166_v63 }
  0xfb   : > { %3133 = vmatprep.mubr.msk.f32.mxu0 %vm1290_vm3, %v1229_v20  ;;  %3173 = vmatprep.subr.msk.mxu1 %vm1307_vm1, %v2898_v59  ;;  %v1021_v20 = vand.u32 15, %v957_v5  ;;  %v3716_v26 = vsel %vm1244_vm12, 0.0, %v1167_v0 }
  0xfd   : > { %3123 = vmatmul.mubr.msk.f32.gmra.mxu1 %vm1290_vm3, %v1278_v13  ;;  %3134 = vmatmul.mubr.msk.f32.vlgmr.msra.gmra.mxu0 %vm1290_vm3, %v1124_v33  ;;  %v1134_v33 = vsel %vm1117_vm4, %v1131_v50, %v1133_v29  ;;  %vm1199_vm14 = vcmp.eq.s32.totalorder %v1021_v20, 0  ;;  %v933_v50 = vadd.f32 %v3527_v28, %v931_v46 }
  0xfe   : > { %3125 = vmatprep.mubr.msk.f32.mxu1 %vm1290_vm3, %v3700_v19  ;;  %3136 = vmatprep.mubr.msk.f32.mxu0 %vm1290_vm3, %v3631_v17  ;;  %v1235_v35 = vsel %vm1199_vm14, 0.0, %v1134_v33 }
  0xff   : > { %3160 = vmatpush3.msk.msra.mxu0 %vm1307_vm1, %v3608_v24  ;;  %v3728_v24 = vmax.f32 %v749_v16, 0.0  ;;  %v935_v28 = vmax.f32 %v933_v50, 0.0 }
 0x100   : > { %3187 = vmatprep.subr.msk.mxu0 %vm1307_vm1, %v2908_v18 }
 0x101   : > { %3126 = vmatmul.mubr.msk.f32.gmra.mxu1 %vm1290_vm3, %v3716_v26  ;;  %3137 = vmatmul.mubr.msk.f32.gmra.mxu0 %vm1290_vm3, %v3647_v42  ;;  %v1135_v37 = vrot.slane %v3728_v24, 7  ;;  %v1172_v49 = vrot.slane %v3728_v24, 1 }
 0x102   : > { %3128 = vmatprep.mubr.msk.f32.mxu1 %vm1290_vm3, %v3725_v30  ;;  %3139 = vmatprep.mubr.msk.f32.mxu0 %vm1290_vm3, %v3655_v25 }
 0x103   : > { %v1136_v40 = vsel %vm1117_vm4, %v1133_v29, %v1135_v37  ;;  %v1173_v23 = vsel %vm1154_vm9, %v1170_v22, %v1172_v49  ;;  %v1175_v52 = vsel %vm1154_vm9, %v1172_v49, %v1174_v47 }
 0x105   : > { %3129 = vmatmul.mubr.msk.f32.gmra.mxu1 %vm1290_vm3, %v3738_v34  ;;  %3140 = vmatmul.mubr.msk.f32.gmra.mxu0 %vm1290_vm3, %v3667_v54 }
 0x106   : > { %3142 = vmatprep.mubr.msk.f32.mxu0 %vm1290_vm3, %v1235_v35  ;;  %3147 = vmatprep.mubr.msk.f32.mxu1 %vm1290_vm3, %v3538_v43 }
 0x109   : > { %3143 = vmatmul.mubr.msk.f32.gmra.mxu0 %vm1290_vm3, %v1136_v40  ;;  %3148 = vmatmul.mubr.msk.f32.vlgmr.msra.gmra.mxu1 %vm1290_vm3, %v3545_v51  ;;  %v958_v51 = vadd.s32 72, %v3522_v27 }
 0x10a   : > { %3174 = vmatpush3.msk.msra.mxu1 %vm1307_vm1, %v2898_v59  ;;  %3150 = vmatprep.mubr.msk.f32.mxu1 %vm1290_vm3, %v3550_v55 }
 0x10b   : > { %3161 = vmatprep.mubr.msk.f32.mxu0 %vm1290_vm3, %v1161_v60  ;;  %3201 = vmatprep.subr.msk.mxu1 %vm1307_vm1, %v2918_v41  ;;  %v1028_v48 = vand.u32 15, %v958_v51 }
 0x10d   : > { %3151 = vmatmul.mubr.msk.f32.gmra.mxu1 %vm1290_vm3, %v3573_v1  ;;  %3162 = vmatmul.mubr.msk.f32.vlgmr.msra.gmra.mxu0 %vm1290_vm3, %v1278_v13  ;;  %vm1248_vm2 = vcmp.eq.s32.totalorder %v1028_v48, 15 }
 0x10e   : > { %3153 = vmatprep.mubr.msk.f32.mxu1 %vm1290_vm3, %v3580_v11  ;;  %3164 = vmatprep.mubr.msk.f32.mxu0 %vm1290_vm3, %v3700_v19  ;;  %v1284_v56 = vsel %vm1248_vm2, 0.0, %v1175_v52 }
 0x10f   : > { %3188 = vmatpush3.msk.msra.mxu0 %vm1307_vm1, %v2908_v18 }
 0x110   : > { %3215 = vmatprep.subr.msk.mxu0 %vm1307_vm1, %v2468_v61 }
 0x111   : > { %3154 = vmatmul.mubr.msk.f32.gmra.mxu1 %vm1290_vm3, %v3633_v38  ;;  %3165 = vmatmul.mubr.msk.f32.gmra.mxu0 %vm1290_vm3, %v3716_v26 }
 0x112   : > { %3156 = vmatprep.mubr.msk.f32.mxu1 %vm1290_vm3, %v3691_v10  ;;  %3167 = vmatprep.mubr.msk.f32.mxu0 %vm1290_vm3, %v3725_v30 }
 0x115   : > { %3157 = vmatmul.mubr.msk.f32.gmra.mxu1 %vm1290_vm3, %v3728_v24  ;;  %3168 = vmatmul.mubr.msk.f32.gmra.mxu0 %vm1290_vm3, %v3738_v34 }
 0x116   : > { %3170 = vmatprep.mubr.msk.f32.mxu0 %vm1290_vm3, %v1173_v23  ;;  %3175 = vmatprep.mubr.msk.f32.mxu1 %vm1290_vm3, %v3631_v17  ;;  %v947_v17 = vsel %vm3759_vm15, 0.0, %v935_v28 }
 0x119   : > { %3171 = vmatmul.mubr.msk.f32.gmra.mxu0 %vm1290_vm3, %v1284_v56  ;;  %3176 = vmatmul.mubr.msk.f32.vlgmr.msra.gmra.mxu1 %vm1290_vm3, %v3647_v42  ;;  %v1138_v42 = vsel %vm1117_vm4, %v1135_v37, %v1137_v57 }
 0x11a   : > { %3202 = vmatpush3.msk.msra.mxu1 %vm1307_vm1, %v2918_v41  ;;  %3178 = vmatprep.mubr.msk.f32.mxu1 %vm1290_vm3, %v3655_v25  ;;  %v1139_v25 = vrot.slane %v947_v17, 7 }
 0x11b   : > { %3189 = vmatprep.mubr.msk.f32.mxu0 %vm1290_vm3, %v3550_v55  ;;  %v1237_v55 = vsel %vm1201_vm5, 0.0, %v1138_v42 }
 0x11d   : > { %3179 = vmatmul.mubr.msk.f32.gmra.mxu1 %vm1290_vm3, %v3667_v54  ;;  %3190 = vmatmul.mubr.msk.f32.vlgmr.msra.gmra.mxu0 %vm1290_vm3, %v3573_v1  ;;  %v1140_v1 = vsel %vm1117_vm4, %v1137_v57, %v1139_v25 }
 0x11e   : > { %3181 = vmatprep.mubr.msk.f32.mxu1 %vm1290_vm3, %v1235_v35  ;;  %3192 = vmatprep.mubr.msk.f32.mxu0 %vm1290_vm3, %v3580_v11  ;;  %v960_v11 = vadd.s32 88, %v3522_v27 }
 0x11f   : > { %3216 = vmatpush3.msk.msra.mxu0 %vm1307_vm1, %v2468_v61 }
 0x120   : > { %v1042_v54 = vand.u32 15, %v960_v11 }
 0x121   : > { %3182 = vmatmul.mubr.msk.f32.gmra.mxu1 %vm1290_vm3, %v1136_v40  ;;  %3193 = vmatmul.mubr.msk.f32.gmra.mxu0 %vm1290_vm3, %v3633_v38  ;;  %v1176_v38 = vrot.slane %v947_v17, 1 }
 0x122   : > { %3184 = vmatprep.mubr.msk.f32.mxu1 %vm1290_vm3, %v1237_v55  ;;  %3195 = vmatprep.mubr.msk.f32.mxu0 %vm1290_vm3, %v3691_v10  ;;  %vm1250_vm4 = vcmp.eq.s32.totalorder %v1042_v54, 15 }
 0x123   : > { %v1177_v59 = vsel %vm1154_vm9, %v1174_v47, %v1176_v38  ;;  %v1190_v60 = vsel %vm1154_vm9, %v1176_v38, 0.0 }
 0x124   : > { %v1286_v27 = vsel %vm1250_vm4, 0.0, %v1190_v60 }
 0x125   : > { %3185 = vmatmul.mubr.msk.f32.gmra.mxu1 %vm1290_vm3, %v1140_v1  ;;  %3196 = vmatmul.mubr.msk.f32.gmra.mxu0 %vm1290_vm3, %v3728_v24 }
 0x126   : > { %3198 = vmatprep.mubr.msk.f32.mxu0 %vm1290_vm3, %v946_v45  ;;  %3203 = vmatprep.mubr.msk.f32.mxu1 %vm1290_vm3, %v3700_v19 }
 0x129   : > { %3199 = vmatmul.mubr.msk.f32.gmra.mxu0 %vm1290_vm3, %v947_v17  ;;  %3204 = vmatmul.mubr.msk.f32.vlgmr.msra.gmra.mxu1 %vm1290_vm3, %v3716_v26 }
 0x12a   : > { %3206 = vmatprep.mubr.msk.f32.mxu1 %vm1290_vm3, %v3725_v30 }
 0x12d   : > { %3207 = vmatmul.mubr.msk.f32.gmra.mxu1 %vm1290_vm3, %v3738_v34 }
 0x12e   : > { %3209 = vmatprep.mubr.msk.f32.mxu1 %vm1290_vm3, %v1173_v23 }
 0x131   : > { %3210 = vmatmul.mubr.msk.f32.gmra.mxu1 %vm1290_vm3, %v1284_v56 }
 0x132   : > { %3212 = vmatprep.mubr.msk.f32.mxu1 %vm1290_vm3, %v1177_v59 }
 0x135   : > { %3213 = vmatmul.mubr.msk.f32.gmra.mxu1 %vm1290_vm3, %v1286_v27 }
 0x1a9   : > { %v3093_v62 = vpop.f32.mrf.mxu1 }
 0x1ab   : > { %v1377_v63 = vpop.f32.mrf.mxu1 }
 0x1ad   : > { %v3096_v3 = vpop.f32.mrf.mxu1  ;;  %v3107_v5 = vpop.f32.mrf.mxu0 }
 0x1ae   : > { %v1515_v1 = vadd.f32 %v3107_v5, %v3093_v62 }
 0x1af   : > { %v1387_v10 = vpop.f32.mrf.mxu1  ;;  %v1509_v12 = vpop.f32.mrf.mxu0 }
 0x1b0   : > { %v1510_v54 = vadd.f32 %v1509_v12, %v1377_v63 }
 0x1b1   : > { %v3099_v13 = vpop.f32.mrf.mxu1  ;;  %v3110_v14 = vpop.f32.mrf.mxu0 }
 0x1b2   : > { %v1525_v61 = vadd.f32 %v3110_v14, %v3096_v3 }
 0x1b3   : > { %v3847_v19 = vpop.f32.mrf.mxu1  ;;  %v1519_v0 = vpop.f32.mrf.mxu0 }
 0x1b4   : > { %v1520_v2 = vadd.f32 %v1519_v0, %v1387_v10 }
 0x1b5   : > { %v3849_v15 = vpop.f32.mrf.mxu1  ;;  %v3113_v18 = vpop.f32.mrf.mxu0 }
 0x1b7   : > { %v3851_v16 = vpop.f32.mrf.mxu1  ;;  %v1529_v20 = vpop.f32.mrf.mxu0 }
 0x1b8   : > { %v1530_v63 = vadd.f32 %v1529_v20, %v3847_v19 }
 0x1b9   : > { %v3853_v21 = vpop.f32.mrf.mxu0  ;;  %v3121_v22 = vpop.f32.mrf.mxu1 }
 0x1ba   : > { %v1683_v59 = vadd.f32 %v3121_v22, %v1515_v1  ;;  %v1545_v10 = vadd.f32 %v3853_v21, %v3849_v15  ;;  %v3884_v15 = vld [vmem:[%s3972_s7] ss:$0 sm:$0xff] }
 0x1bb   : > { %v3855_v26 = vpop.f32.mrf.mxu0  ;;  %v1643_v29 = vpop.f32.mrf.mxu1 }
 0x1bc   : > { %v1682_v8 = vadd.f32 %v1643_v29, %v1510_v54  ;;  %v1540_v19 = vadd.f32 %v3855_v26, %v3851_v16 }
 0x1bd   : > { %v3124_v30 = vpop.f32.mrf.mxu1  ;;  %v3135_v31 = vpop.f32.mrf.mxu0 }
 0x1be   : > { %v1807_v9 = vadd.f32 %v3135_v31, %v1683_v59  ;;  %v1685_v4 = vadd.f32 %v3124_v30, %v1525_v61 }
 0x1bf   : > { %v1653_v24 = vpop.f32.mrf.mxu1  ;;  %v1767_v32 = vpop.f32.mrf.mxu0 }
 0x1c1   : > { %v3127_v33 = vpop.f32.mrf.mxu1  ;;  %v3138_v34 = vpop.f32.mrf.mxu0 }
 0x1c2   : > { %v1809_v62 = vadd.f32 %v3138_v34, %v1685_v4 }
 0x1c3   : > { %v1663_v35 = vpop.f32.mrf.mxu1  ;;  %v1777_v36 = vpop.f32.mrf.mxu0 }
 0x1c5   : > { %v3857_v37 = vpop.f32.mrf.mxu1  ;;  %v3141_v39 = vpop.f32.mrf.mxu0 }
 0x1c6   : > { %v1689_v20 = vadd.f32 %v3857_v37, %v1545_v10 }
 0x1c7   : > { %v3859_v40 = vpop.f32.mrf.mxu1  ;;  %v1787_v41 = vpop.f32.mrf.mxu0 }
 0x1c9   : > { %v3861_v44 = vpop.f32.mrf.mxu0  ;;  %v3149_v43 = vpop.f32.mrf.mxu1 }
 0x1ca   : > { %4003 = vst [vmem:[#allocation8_spill] sm:$0xff] %v3861_v44 }
 0x1cb   : > { %v3863_v51 = vpop.f32.mrf.mxu0  ;;  %v1889_v45 = vpop.f32.mrf.mxu1 }
 0x1cc   : > { %4004 = vst [vmem:[#allocation9_spill] sm:$0xff] %v3863_v51  ;;  %v1684_v51 = vadd.f32 %v1653_v24, %v1520_v2 }
 0x1cd   : > { %v3152_v46 = vpop.f32.mrf.mxu1  ;;  %v3163_v47 = vpop.f32.mrf.mxu0 }
 0x1ce   : > { %v1808_v3 = vadd.f32 %v1777_v36, %v1684_v51  ;;  %v1931_v14 = vadd.f32 %v3152_v46, %v1809_v62 }
 0x1cf   : > { %v1899_v48 = vpop.f32.mrf.mxu1  ;;  %v2013_v49 = vpop.f32.mrf.mxu0 }
 0x1d1   : > { %v3155_v50 = vpop.f32.mrf.mxu1  ;;  %v3166_v23 = vpop.f32.mrf.mxu0 }
 0x1d2   : > { %v2055_v2 = vadd.f32 %v3166_v23, %v1931_v14 }
 0x1d3   : > { %v1909_v52 = vpop.f32.mrf.mxu1  ;;  %v2023_v53 = vpop.f32.mrf.mxu0 }
 0x1d5   : > { %v3865_v56 = vpop.f32.mrf.mxu1  ;;  %v3169_v28 = vpop.f32.mrf.mxu0 }
 0x1d6   : > { %4005 = vst [vmem:[#allocation10_spill] sm:$0xff] %v3865_v56 }
 0x1d7   : > { %v3867_v57 = vpop.f32.mrf.mxu1  ;;  %v3869_v58 = vpop.f32.mrf.mxu0 }
 0x1d8   : > { %4006 = vst [vmem:[#allocation11_spill] sm:$0xff] %v3867_v57  ;;  %4007 = vst [vmem:[#allocation12_spill] sm:$0xff] %v3869_v58  ;;  %v1806_v57 = vadd.f32 %v1767_v32, %v1682_v8  ;;  %v1535_v58 = vadd.f32 %v3113_v18, %v3099_v13  ;;  %v1686_v8 = vadd.f32 %v1663_v35, %v1530_v63 }
 0x1d9   : > { %v3871_v17 = vpop.f32.mrf.mxu0  ;;  %v3177_v42 = vpop.f32.mrf.mxu1  ;;  %v1930_v18 = vadd.f32 %v1899_v48, %v1808_v3 }
 0x1da   : > { %4008 = vst [vmem:[#allocation13_spill] sm:$0xff] %v3871_v17  ;;  %v1929_v17 = vadd.f32 %v3149_v43, %v1807_v9  ;;  %v1928_v5 = vadd.f32 %v1889_v45, %v1806_v57  ;;  %v1687_v12 = vadd.f32 %v3127_v33, %v1535_v58  ;;  %v1810_v24 = vadd.f32 %v1787_v41, %v1686_v8 }
 0x1db   : > { %v3873_v25 = vpop.f32.mrf.mxu0  ;;  %v2137_v55 = vpop.f32.mrf.mxu1  ;;  %v2054_v21 = vadd.f32 %v2023_v53, %v1930_v18 }
 0x1dc   : > { %4009 = vst [vmem:[#allocation14_spill] sm:$0xff] %v3873_v25  ;;  %v2053_v44 = vadd.f32 %v3163_v47, %v1929_v17  ;;  %v2052_v29 = vadd.f32 %v2013_v49, %v1928_v5  ;;  %v1811_v9 = vadd.f32 %v3141_v39, %v1687_v12  ;;  %v1688_v39 = vadd.f32 %v3859_v40, %v1540_v19  ;;  %v2929_v47 = vld [vmem:[%s3973_s8] ss:$0 sm:$0xff]  ;;  %v4011_v49 = vld [vmem:[#allocation9_spill] sm:$0xff] }
 0x1dd   : > { %v3180_v11 = vpop.f32.mrf.mxu1  ;;  %v3191_v38 = vpop.f32.mrf.mxu0  ;;  %v1932_v51 = vadd.f32 %v1909_v52, %v1810_v24  ;;  %v4012_v23 = vld [vmem:[#allocation10_spill] sm:$0xff] }
 0x1de   : > { %v2177_v31 = vadd.f32 %v3177_v42, %v2053_v44  ;;  %v2176_v4 = vadd.f32 %v2137_v55, %v2052_v29  ;;  %v1933_v32 = vadd.f32 %v3155_v50, %v1811_v9  ;;  %v2179_v34 = vadd.f32 %v3180_v11, %v2055_v2  ;;  %v4010_v44 = vld [vmem:[#allocation8_spill] sm:$0xff] }
 0x1df   : > { %v2147_v60 = vpop.f32.mrf.mxu1  ;;  %v2259_v27 = vpop.f32.mrf.mxu0  ;;  %v1813_v43 = vadd.f32 %v4010_v44, %v1689_v20  ;;  %v1812_v50 = vadd.f32 %v4011_v49, %v1688_v39  ;;  %v4013_v40 = vld [vmem:[#allocation12_spill] sm:$0xff] }
 0x1e0   : > { %v2299_v30 = vadd.f32 %v3191_v38, %v2177_v31  ;;  %v2298_v35 = vadd.f32 %v2259_v27, %v2176_v4  ;;  %v2057_v16 = vadd.f32 %v3169_v28, %v1933_v32  ;;  %v2178_v41 = vadd.f32 %v2147_v60, %v2054_v21 }
 0x1e1   : > { %v3183_v6 = vpop.f32.mrf.mxu1  ;;  %v3194_v7 = vpop.f32.mrf.mxu0  ;;  %v1935_v53 = vadd.f32 %v4012_v23, %v1813_v43  ;;  %v2056_v57 = vadd.f32 %v4013_v40, %v1932_v51  ;;  %v4015_v1 = vld [vmem:[#allocation13_spill] sm:$0xff]  ;;  %v4017_v23 = vld [vmem:[#allocation3_spill] sm:$0xff] }
 0x1e2   : > { %v2301_v45 = vadd.f32 %v3194_v7, %v2179_v34  ;;  %v2181_v52 = vadd.f32 %v3183_v6, %v2057_v16  ;;  %v4014_v7 = vld [vmem:[#allocation11_spill] sm:$0xff] }
 0x1e3   : > { %v2157_v56 = vpop.f32.mrf.mxu1  ;;  %v2269_v25 = vpop.f32.mrf.mxu0  ;;  %v1934_v55 = vadd.f32 %v4014_v7, %v1812_v50  ;;  %v2059_v11 = vadd.f32 %v4015_v1, %v1935_v53  ;;  %v4016_v63 = vld [vmem:[#allocation14_spill] sm:$0xff] }
 0x1e4   : > { %v2300_v28 = vadd.f32 %v2269_v25, %v2178_v41  ;;  %v2180_v38 = vadd.f32 %v2157_v56, %v2056_v57 }
 0x1e5   : > { %v3186_v22 = vpop.f32.mrf.mxu1  ;;  %v3197_v13 = vpop.f32.mrf.mxu0  ;;  %v2058_v12 = vadd.f32 %v4016_v63, %v1934_v55 }
 0x1e6   : > { %v2303_v27 = vadd.f32 %v3197_v13, %v2181_v52  ;;  %v2183_v6 = vadd.f32 %v3186_v22, %v2059_v11  ;;  %v4019_v11 = vld [vmem:[#allocation5_spill] sm:$0xff] }
 0x1e7   : > { %v2167_v0 = vpop.f32.mrf.mxu1  ;;  %v2279_v26 = vpop.f32.mrf.mxu0 }
 0x1e8   : > { %v2302_v3 = vadd.f32 %v2279_v26, %v2180_v38  ;;  %v2182_v10 = vadd.f32 %v2167_v0, %v2058_v12 }
 0x1e9   : > { %v3205_v33 = vpop.f32.mrf.mxu1  ;;  %v3200_v54 = vpop.f32.mrf.mxu0 }
 0x1ea   : > { %v2423_v36 = vadd.f32 %v3205_v33, %v2299_v30  ;;  %v2305_v2 = vadd.f32 %v3200_v54, %v2183_v6 }
 0x1eb   : > { %v2383_v37 = vpop.f32.mrf.mxu1  ;;  %v2289_v56 = vpop.f32.mrf.mxu0 }
 0x1ec   : > { %v2438_v46 = vmul.f32 %v3884_v15, %v2423_v36  ;;  %v2422_v48 = vadd.f32 %v2383_v37, %v2298_v35  ;;  %v2304_v22 = vadd.f32 %v2289_v56, %v2182_v10 }
 0x1ed   : > { %v3208_v58 = vpop.f32.mrf.mxu1 }
 0x1ee   : > { %v2437_v17 = vmul.f32 %v3884_v15, %v2422_v48  ;;  %v2425_v42 = vadd.f32 %v3208_v58, %v2301_v45  ;;  %v2453_v59 = vadd.f32 %v2929_v47, %v2438_v46  ;;  %v2940_v45 = vld [vmem:[%s3976_s11] ss:$0 sm:$0xff] }
 0x1ef   : > { %v2393_v60 = vpop.f32.mrf.mxu1 }
 0x1f0   : > { %v2452_v61 = vadd.f32 %v2929_v47, %v2437_v17  ;;  %v2440_v62 = vmul.f32 %v3884_v15, %v2425_v42  ;;  %v2424_v5 = vadd.f32 %v2393_v60, %v2300_v28  ;;  %v2461_v8 = vmax.f32 %v2453_v59, 0.0  ;;  %v4018_v28 = vld [vmem:[#allocation2_spill] sm:$0xff] }
 0x1f1   : > { %v3211_v25 = vpop.f32.mrf.mxu1 }
 0x1f2   : > { %v2460_v14 = vmax.f32 %v2452_v61, 0.0  ;;  %v2439_v29 = vmul.f32 %v3884_v15, %v2424_v5  ;;  %v2427_v31 = vadd.f32 %v3211_v25, %v2303_v27  ;;  %v2455_v9 = vadd.f32 %v2929_v47, %v2440_v62  ;;  %v4020_v61 = vld [vmem:[#allocation4_spill] sm:$0xff]  ;;  %v4021_v25 = vld [vmem:[#allocation7_spill] sm:$0xff] }
 0x1f3   : > { %v2403_v18 = vpop.f32.mrf.mxu1 }
 0x1f4   : > { %v2454_v13 = vadd.f32 %v2929_v47, %v2439_v29  ;;  %v2442_v4 = vmul.f32 %v3884_v15, %v2427_v31  ;;  %v2426_v30 = vadd.f32 %v2403_v18, %v2302_v3  ;;  %3217 = vmatprep.mubr.msk.f32.mxu0 %vm1290_vm3, %v2460_v14  ;;  %v2463_v0 = vmax.f32 %v2455_v9, 0.0 }
 0x1f5   : > { %v3214_v19 = vpop.f32.mrf.mxu1  ;;  %3218 = vmatmul.mubr.msk.f32.vlgmr.msra.gmra.mxu0 %vm1290_vm3, %v2461_v8  ;;  %v4022_v8 = vld [vmem:[#allocation6_spill] sm:$0xff] }
 0x1f6   : > { %v2462_v20 = vmax.f32 %v2454_v13, 0.0  ;;  %v2441_v24 = vmul.f32 %v3884_v15, %v2426_v30  ;;  %v2429_v32 = vadd.f32 %v3214_v19, %v2305_v2  ;;  %v2457_v33 = vadd.f32 %v2929_v47, %v2442_v4  ;;  %v3273_v13 = vld [vmem:[%s3430_s30 + $0x38] sm:$0xff] }
 0x1f7   : > { %v2413_v21 = vpop.f32.mrf.mxu1 }
 0x1f8   : > { %v2456_v34 = vadd.f32 %v2929_v47, %v2441_v24  ;;  %v2444_v35 = vmul.f32 %v3884_v15, %v2429_v32  ;;  %v2428_v36 = vadd.f32 %v2413_v21, %v2304_v22  ;;  %3220 = vmatprep.mubr.msk.f32.mxu0 %vm1290_vm3, %v2462_v20  ;;  %v2465_v43 = vmax.f32 %v2457_v33, 0.0  ;;  %v3274_v22 = vld [vmem:[%s3430_s30 + $0x30] sm:$0xff] }
 0x1f9   : > { %3221 = vmatmul.mubr.msk.f32.gmra.mxu0 %vm1290_vm3, %v2463_v0 }
 0x1fa   : > { %v2464_v39 = vmax.f32 %v2456_v34, 0.0  ;;  %v2443_v44 = vmul.f32 %v3884_v15, %v2428_v36  ;;  %v2459_v51 = vadd.f32 %v2929_v47, %v2444_v35  ;;  %v2939_v15 = vld [vmem:[%s3975_s10] ss:$0 sm:$0xff] }
 0x1fc   : > { %v2458_v16 = vadd.f32 %v2929_v47, %v2443_v44  ;;  %3223 = vmatprep.mubr.msk.f32.mxu0 %vm1290_vm3, %v2464_v39  ;;  %v2467_v37 = vmax.f32 %v2459_v51, 0.0 }
 0x1fd   : > { %3224 = vmatmul.mubr.msk.f32.gmra.mxu0 %vm1290_vm3, %v2465_v43 }
 0x1fe   : > { %v2466_v26 = vmax.f32 %v2458_v16, 0.0 }
 0x200   : > { %3226 = vmatprep.mubr.msk.f32.mxu0 %vm1290_vm3, %v2466_v26 }
 0x201   : > { %3227 = vmatmul.mubr.msk.f32.gmra.mxu0 %vm1290_vm3, %v2467_v37 }
 0x2b5   : > { %v3219_v41 = vpop.f32.mrf.mxu0 }
 0x2b6   : > { %v2609_v46 = vmul.f32 %v3219_v41, %v2939_v15 }
 0x2b7   : > { %v2562_v47 = vpop.f32.mrf.mxu0 }
 0x2b8   : > { %v2624_v48 = vadd.f32 %v2940_v45, %v2609_v46  ;;  %v2608_v49 = vmul.f32 %v2939_v15, %v2562_v47 }
 0x2b9   : > { %v3222_v50 = vpop.f32.mrf.mxu0 }
 0x2ba   : > { %v2632_v53 = vadd.f32 %v2624_v48, %v4017_v23  ;;  %v2623_v40 = vadd.f32 %v2940_v45, %v2608_v49  ;;  %v2611_v57 = vmul.f32 %v3222_v50, %v2939_v15 }
 0x2bb   : > { %v2572_v58 = vpop.f32.mrf.mxu0 }
 0x2bc   : > { %v2640_v52 = vmax.f32 %v2632_v53, 0.0  ;;  %v2631_v17 = vadd.f32 %v2623_v40, %v4018_v28  ;;  %v2626_v42 = vadd.f32 %v2940_v45, %v2611_v57  ;;  %v2610_v7 = vmul.f32 %v2939_v15, %v2572_v58 }
 0x2bd   : > { %v3225_v55 = vpop.f32.mrf.mxu0 }
 0x2be   : > { %2648 = vst.msk [vmem:[%s3925_s19 + $0x8] sm:$0xff] %vm592_vm0, %v2640_v52  ;;  %v2639_v1 = vmax.f32 %v2631_v17, 0.0  ;;  %v2634_v38 = vadd.f32 %v2626_v42, %v4019_v11  ;;  %v2625_v54 = vadd.f32 %v2940_v45, %v2610_v7  ;;  %v2613_v59 = vmul.f32 %v3225_v55, %v2939_v15 }
 0x2bf   : > { %v2582_v60 = vpop.f32.mrf.mxu0 }
 0x2c0   : > { %2647 = vst.msk [vmem:[%s3925_s19] sm:$0xff] %vm592_vm0, %v2639_v1  ;;  %v2642_v27 = vmax.f32 %v2634_v38, 0.0  ;;  %v2633_v62 = vadd.f32 %v2625_v54, %v4020_v61  ;;  %v2628_v5 = vadd.f32 %v2940_v45, %v2613_v59  ;;  %v2612_v63 = vmul.f32 %v2939_v15, %v2582_v60 }
 0x2c1   : > { %v3228_v12 = vpop.f32.mrf.mxu0 }
 0x2c2   : > { %2650 = vst.msk [vmem:[%s3925_s19 + $0x18] sm:$0xff] %vm592_vm0, %v2642_v27  ;;  %v2641_v6 = vmax.f32 %v2633_v62, 0.0  ;;  %v2636_v3 = vadd.f32 %v2628_v5, %v4021_v25  ;;  %v2627_v14 = vadd.f32 %v2940_v45, %v2612_v63  ;;  %v2615_v29 = vmul.f32 %v3228_v12, %v2939_v15 }
 0x2c3   : > { %v2592_v31 = vpop.f32.mrf.mxu0 }
 0x2c4   : > { %2649 = vst.msk [vmem:[%s3925_s19 + $0x10] sm:$0xff] %vm592_vm0, %v2641_v6  ;;  %v2644_v10 = vmax.f32 %v2636_v3, 0.0  ;;  %v2635_v56 = vadd.f32 %v2627_v14, %v4022_v8  ;;  %v2630_v9 = vadd.f32 %v2940_v45, %v2615_v29  ;;  %v2614_v18 = vmul.f32 %v2939_v15, %v2592_v31 }
 0x2c6   : > { %2652 = vst.msk [vmem:[%s3925_s19 + $0x28] sm:$0xff] %vm592_vm0, %v2644_v10  ;;  %v2643_v2 = vmax.f32 %v2635_v56, 0.0  ;;  %v2638_v4 = vadd.f32 %v3273_v13, %v2630_v9  ;;  %v2629_v30 = vadd.f32 %v2940_v45, %v2614_v18 }
 0x2c8   : > { %2651 = vst.msk [vmem:[%s3925_s19 + $0x20] sm:$0xff] %vm592_vm0, %v2643_v2  ;;  %v2646_v19 = vmax.f32 %v2638_v4, 0.0  ;;  %v2637_v20 = vadd.f32 %v3274_v22, %v2629_v30 }
 0x2ca   : > { %2654 = vst.msk [vmem:[%s3925_s19 + $0x38] sm:$0xff] %vm592_vm0, %v2646_v19  ;;  %v2645_v24 = vmax.f32 %v2637_v20, 0.0 }
 0x2cc   : > { %2653 = vst.msk [vmem:[%s3925_s19 + $0x30] sm:$0xff] %vm592_vm0, %v2645_v24 }
 0x2cd PF: > { %s22_s25 = sadd.s32 1, %s3313_s25   ;;  %s4023_s21 = smov %s3305_s23 }
 0x2ce   : > { %p19_p13 = scmp.ge.s32.totalorder %s22_s25, 10   ;;  %s4024_s22 = smov %s3309_s24 }
 0x2cf   : > { %s4025_s23 = smov %s4028_s26  ;;  %s4026_s24 = smov %s4032_s27 }
 0x2d0   :  { %21 = sbr.rel (!%p19_p13) target bundleno = 3 (0x3), region = 112 }

</bundles_post_ra>
